<compile_context>
chip_gen: v5e
topology: v5e:2x2
jax: 0.10.0
libtpu: 0.0.40
codegen_flags: <defaults>
</compile_context>

<pallas_src>
import functools

import jax
import jax.numpy as jnp
import numpy as np
from jax.experimental import pallas as pl
from jax.experimental.pallas import tpu as pltpu


# ---------------------------------------------------------------------------
# Small helpers
# ---------------------------------------------------------------------------
def _round_up(x, m):
    return ((x + m - 1) // m) * m


def _layer_norm(x, gamma, beta, eps=1e-5):
    mean = jnp.mean(x, axis=-1, keepdims=True)
    c = x - mean
    var = jnp.mean(c * c, axis=-1, keepdims=True)
    return c * jax.lax.rsqrt(var + eps) * gamma + beta


def _vmem_capacity_bytes():
    """Per-core VMEM capacity (128 MiB on v5e/v6e, 64 MiB on v7x)."""
    try:
        info = pltpu.get_tpu_info()
        cap = int(getattr(info, "vmem_capacity_bytes", 0) or 0)
        if cap > 0:
            return cap
    except Exception:
        pass
    return 64 * 1024 * 1024          # conservative default (v7x per-TensorCore VMEM)


def _vmem_bytes_estimate(t_tile, F, K, P, L, act_bytes, w_bytes):
    """Conservative per-grid-step VMEM footprint for a group of L fused layers."""
    io = 2 * t_tile * F * (act_bytes + 4)                        # in + out tiles, double-buffered
    weights = 2 * L * ((K + 2) * F * F * w_bytes + 7 * F * 4)    # taps, W1, W2, biases, LN (x2 buffers)
    xbuf = L * (P + t_tile) * F * w_bytes                        # carried conv-history scratch
    interm = 10 * t_tile * F * 4                                 # f32 temporaries / relayout headroom
    return io + weights + xbuf + interm


def _choose_t_tile(T, F, K, P, L, act_bytes, w_bytes, budget):
    """Largest multiple-of-16 time tile whose VMEM estimate fits the budget."""
    T16 = _round_up(T, 16)
    cands = ([T16] if T16 <= 2048 else []) + \
            [c for c in (2048, 1024, 512, 256, 128, 64, 32, 16) if c < T16]
    for tt in cands:
        if _vmem_bytes_estimate(tt, F, K, P, L, act_bytes, w_bytes) <= budget:
            return tt
    return 16


# ---------------------------------------------------------------------------
# Fused multi-layer Pallas kernel (conv block + FC block, L layers per call)
# ---------------------------------------------------------------------------
def _make_group_call(B, T_pad, F, K, dilation, n_t, t_tile, L, out_dtype,
                     compute_dtype, vmem_limit_bytes,
                     transpose_in, transpose_out, alias_io):
    P = (K - 1) * dilation

    def kernel(*refs):
        (x_ref, taps_ref, cb_ref, g1_ref, be1_ref,
         w1_ref, fb1_ref, w2_ref, fb2_ref, g2_ref, be2_ref, o_ref) = refs[:12]
        xbuf_ref = refs[12] if P > 0 else None
        t = pl.program_id(1)

        if transpose_in:
            y = x_ref[0, :, :].astype(jnp.float32).T       # (F, t_tile) -> (t_tile, F)
        else:
            y = x_ref[0, :, :].astype(jnp.float32)         # (t_tile, F)

        for l in range(L):                                  # static unroll over fused layers
            xc = y.astype(compute_dtype)

            # ---- causal dilated conv: K shifted (t_tile,F)@(F,F) MXU dots; the
            #      (K-1)*dilation rows of history are carried in VMEM scratch ----
            if P > 0:
                @pl.when(t == 0)
                def _zero_history(l=l):
                    xbuf_ref[l, 0:P, :] = jnp.zeros((P, F), compute_dtype)

                xbuf_ref[l, P:P + t_tile, :] = xc
                conv = jnp.dot(xc, taps_ref[l, 0, :, :],
                               preferred_element_type=jnp.float32)
                for j in range(1, K):
                    s = P - j * dilation
                    conv = conv + jnp.dot(xbuf_ref[l, s:s + t_tile, :],
                                          taps_ref[l, j, :, :],
                                          preferred_element_type=jnp.float32)
                # carry the last P rows of this layer's input for the next time tile
                tail = xbuf_ref[l, t_tile:t_tile + P, :]
                xbuf_ref[l, 0:P, :] = tail
            else:
                conv = jnp.dot(xc, taps_ref[l, 0, :, :],
                               preferred_element_type=jnp.float32)

            conv = jnp.maximum(conv + cb_ref[l, :, :], 0.0)               # bias + ReLU (f32)
            y1 = _layer_norm(conv + y, g1_ref[l, :, :], be1_ref[l, :, :])  # residual + LN

            # ---- fully connected block ----
            h = jnp.dot(y1.astype(compute_dtype), w1_ref[l, :, :],
                        preferred_element_type=jnp.float32)
            h = jnp.maximum(h + fb1_ref[l, :, :], 0.0)
            h2 = jnp.dot(h.astype(compute_dtype), w2_ref[l, :, :],
                         preferred_element_type=jnp.float32) + fb2_ref[l, :, :]
            y = _layer_norm(h2 + y1, g2_ref[l, :, :], be2_ref[l, :, :])    # residual + LN

        if transpose_out:
            o_ref[0, :, :] = y.T.astype(o_ref.dtype)
        else:
            o_ref[0, :, :] = y.astype(o_ref.dtype)

    def _const_spec(shape):
        # Grid-invariant weight block (same block index every step -> no re-DMA).
        return pl.BlockSpec(shape, lambda *_: (0,) * len(shape))

    if transpose_in:
        x_spec = pl.BlockSpec((1, F, t_tile), lambda b, t: (b, 0, t))
    else:
        x_spec = pl.BlockSpec((1, t_tile, F), lambda b, t: (b, t, 0))
    if transpose_out:
        out_spec = pl.BlockSpec((1, F, t_tile), lambda b, t: (b, 0, t))
        out_shape = jax.ShapeDtypeStruct((B, F, T_pad), out_dtype)
    else:
        out_spec = pl.BlockSpec((1, t_tile, F), lambda b, t: (b, t, 0))
        out_shape = jax.ShapeDtypeStruct((B, T_pad, F), out_dtype)

    in_specs = [x_spec,
                _const_spec((L, K, F, F)),   # conv taps
                _const_spec((L, 1, F)),      # conv bias (width-repeated)
                _const_spec((L, 1, F)),      # LN1 gamma
                _const_spec((L, 1, F)),      # LN1 beta
                _const_spec((L, F, F)),      # W1^T
                _const_spec((L, 1, F)),      # b1
                _const_spec((L, F, F)),      # W2^T
                _const_spec((L, 1, F)),      # b2
                _const_spec((L, 1, F)),      # LN2 gamma
                _const_spec((L, 1, F))]      # LN2 beta

    scratch_shapes = []
    if P > 0:
        scratch_shapes.append(pltpu.VMEM((L, P + t_tile, F), compute_dtype))

    call_kwargs = {}
    if alias_io:
        call_kwargs["input_output_aliases"] = {0: 0}

    return pl.pallas_call(
        kernel,
        out_shape=out_shape,
        grid_spec=pltpu.PrefetchScalarGridSpec(
            num_scalar_prefetch=0,
            grid=(B, n_t),
            in_specs=in_specs,
            out_specs=out_spec,
            scratch_shapes=scratch_shapes,
        ),
        compiler_params=pltpu.CompilerParams(
            dimension_semantics=("parallel", "arbitrary"),
            vmem_limit_bytes=int(vmem_limit_bytes),
        ),
        **call_kwargs,
    )


# ---------------------------------------------------------------------------
# Parameter preparation (runs ONCE, outside jit, on concrete Python ints)
# ---------------------------------------------------------------------------
def _expand_conv_taps(conv_w, width, K):
    """conv_w: (C, C, 1, K) -> taps (K, F, F) so that y[t] += x[t - j*d] @ taps[j]."""
    C = conv_w.shape[0]
    F = C * width
    eye_w = jnp.eye(width, dtype=conv_w.dtype)
    taps = []
    for j in range(K):
        M = conv_w[:, :, 0, K - 1 - j]                        # weight for delay j*dilation
        # A[ic*W + w, oc*W + v] = M[oc, ic] * delta(w, v)
        A = jnp.einsum("oi,wv->iwov", M, eye_w).reshape(F, F)
        taps.append(A)
    return jnp.stack(taps, axis=0)                            # (K, F, F)


def prepare_encoder_params(params, kernel_width, compute_dtype=jnp.bfloat16):
    """One-time weight preprocessing into kernel-ready stacked arrays (leading L dim)."""
    taps, conv_b, ln1_g, ln1_b = [], [], [], []
    w1t, b1, w2t, b2, ln2_g, ln2_b = [], [], [], [], [], []
    for p in params:
        C, W = int(p["channels"]), int(p["width"])
        F = C * W
        assert p["conv_w"].shape == (C, C, 1, kernel_width)
        assert p["ln1_g"].shape[0] == F, "F = channels * width layout contract"
        taps.append(_expand_conv_taps(p["conv_w"], W, kernel_width).astype(compute_dtype))
        conv_b.append(jnp.repeat(p["conv_b"], W)[None, :].astype(jnp.float32))
        ln1_g.append(p["ln1_g"][None, :].astype(jnp.float32))
        ln1_b.append(p["ln1_b"][None, :].astype(jnp.float32))
        w1t.append(p["w1"].T.astype(compute_dtype))
        b1.append(p["b1"][None, :].astype(jnp.float32))
        w2t.append(p["w2"].T.astype(compute_dtype))
        b2.append(p["b2"][None, :].astype(jnp.float32))
        ln2_g.append(p["ln2_g"][None, :].astype(jnp.float32))
        ln2_b.append(p["ln2_b"][None, :].astype(jnp.float32))
    stack = lambda xs: jnp.stack(xs, axis=0)
    return dict(taps=stack(taps), conv_b=stack(conv_b),
                ln1_g=stack(ln1_g), ln1_b=stack(ln1_b),
                w1t=stack(w1t), b1=stack(b1), w2t=stack(w2t), b2=stack(b2),
                ln2_g=stack(ln2_g), ln2_b=stack(ln2_b))


def init_encoder_params(key, num_features, block_channels, kernel_width):
    params = []
    for channels in block_channels:
        width = num_features // channels
        key, *ks = jax.random.split(key, 7)
        params.append(dict(
            channels=channels,
            width=width,
            conv_w=jax.random.normal(
                ks[0], (channels, channels, 1, kernel_width), jnp.float32
            ) * (1.0 / np.sqrt(channels * kernel_width)),
            conv_b=jax.random.normal(ks[1], (channels,), jnp.float32) * 0.1,
            ln1_g=jnp.ones((num_features,), jnp.float32),
            ln1_b=jnp.zeros((num_features,), jnp.float32),
            w1=jax.random.normal(ks[2], (num_features, num_features), jnp.float32)
            * (1.0 / np.sqrt(num_features)),
            b1=jax.random.normal(ks[3], (num_features,), jnp.float32) * 0.1,
            w2=jax.random.normal(ks[4], (num_features, num_features), jnp.float32)
            * (1.0 / np.sqrt(num_features)),
            b2=jax.random.normal(ks[5], (num_features,), jnp.float32) * 0.1,
            ln2_g=jnp.ones((num_features,), jnp.float32),
            ln2_b=jnp.zeros((num_features,), jnp.float32),
        ))
    return params


# ---------------------------------------------------------------------------
# Forward pass
# ---------------------------------------------------------------------------
def encoder_forward_pallas(x_bft, prep, *, kernel_width, dilation,
                           compute_dtype=jnp.bfloat16):
    """x_bft: (B, num_features, T) -> (B, num_features, T) float32 (PyTorch layout)."""
    B, F, T = x_bft.shape
    K = int(kernel_width)
    P = (K - 1) * int(dilation)
    L_total = int(prep["taps"].shape[0])

    act_dtype = jnp.dtype(compute_dtype)      # bf16 inter-group activation storage
    act_bytes = act_dtype.itemsize
    w_bytes = jnp.dtype(compute_dtype).itemsize

    # Generation-aware VMEM budgets (128 MiB v5e/v6e, 64 MiB v7x).
    cap = _vmem_capacity_bytes()
    vmem_limit = int(min(max(int(cap * 0.85), 32 * 1024 * 1024), 112 * 1024 * 1024))
    tile_budget = int(cap * 0.60)

    # Fuse as many layers per pallas_call as the VMEM weight budget allows.
    w_layer = 2 * ((K + 2) * F * F * w_bytes + 7 * F * 4)
    L_fuse = max(1, min(L_total, int(cap * 0.35) // max(1, w_layer)))
    while True:
        t_tile = _choose_t_tile(T, F, K, P, L_fuse, act_bytes, w_bytes, tile_budget)
        if L_fuse == 1 or _vmem_bytes_estimate(
                t_tile, F, K, P, L_fuse, act_bytes, w_bytes) <= tile_budget:
            break
        L_fuse -= 1

    n_t = -(-T // t_tile)
    T_pad = n_t * t_tile

    # Fold the (B,F,T) <-> (B,T,F) layout change into the first/last kernel when the
    # time tile is lane-legal for a (1, F, t_tile) block; otherwise fall back to XLA.
    fold_transpose = (n_t == 1) or (t_tile % 128 == 0)

    if fold_transpose:
        x = x_bft.astype(act_dtype)                              # stays (B, F, T)
        if T_pad != T:
            x = jnp.pad(x, ((0, 0), (0, 0), (0, T_pad - T)))
    else:
        x = jnp.swapaxes(x_bft, -1, -2).astype(act_dtype)        # (B, T, F)
        if T_pad != T:
            x = jnp.pad(x, ((0, 0), (0, T_pad - T), (0, 0)))

    groups = [(s, min(s + L_fuse, L_total)) for s in range(0, L_total, L_fuse)]
    n_groups = len(groups)

    for gi, (s, e) in enumerate(groups):
        Lg = e - s
        transpose_in = fold_transpose and gi == 0
        transpose_out = fold_transpose and gi == n_groups - 1
        out_dtype = jnp.float32 if gi == n_groups - 1 else act_dtype
        alias_io = (transpose_in == transpose_out) and (jnp.dtype(out_dtype) == act_dtype)
        call = _make_group_call(B, T_pad, F, K, int(dilation), n_t, t_tile, Lg,
                                out_dtype, compute_dtype, vmem_limit,
                                transpose_in, transpose_out, alias_io)
        x = call(x,
                 prep["taps"][s:e], prep["conv_b"][s:e],
                 prep["ln1_g"][s:e], prep["ln1_b"][s:e],
                 prep["w1t"][s:e], prep["b1"][s:e],
                 prep["w2t"][s:e], prep["b2"][s:e],
                 prep["ln2_g"][s:e], prep["ln2_b"][s:e])

    if fold_transpose:
        out = x[:, :, :T] if T_pad != T else x                   # already (B, F, T)
    else:
        out = x[:, :T, :] if T_pad != T else x
        out = jnp.swapaxes(out, -1, -2)
    return out.astype(jnp.float32)


# ---------------------------------------------------------------------------
# Pure-JAX reference (mirrors the PyTorch forward exactly)
# ---------------------------------------------------------------------------
def encoder_forward_ref(x_bft, params, kernel_width, dilation):
    x = x_bft
    P = (kernel_width - 1) * dilation
    for p in params:
        C, W = p["channels"], p["width"]
        B, F, T = x.shape
        xr = x.reshape(B, C, W, T)
        y = jax.lax.conv_general_dilated(
            xr, p["conv_w"], window_strides=(1, 1),
            padding=((0, 0), (P, P)), rhs_dilation=(1, dilation),
            dimension_numbers=("NCHW", "OIHW", "NCHW"),
        )
        y = y[..., :T] + p["conv_b"][None, :, None, None]
        y = jnp.maximum(y, 0.0).reshape(B, F, T) + x
        x = jnp.swapaxes(
            _layer_norm(jnp.swapaxes(y, -1, -2), p["ln1_g"], p["ln1_b"]), -1, -2)
        xt = jnp.swapaxes(x, -1, -2)
        h = jnp.maximum(xt @ p["w1"].T + p["b1"], 0.0)
        h2 = h @ p["w2"].T + p["b2"]
        x = jnp.swapaxes(_layer_norm(h2 + xt, p["ln2_g"], p["ln2_b"]), -1, -2)
    return x


# ---------------------------------------------------------------------------
if __name__ == "__main__":
    B, num_features, T = 2, 16, 16
    block_channels = (2, 4)
    kernel_width = 3
    dilation = 2
    compute_dtype = jnp.bfloat16          # bf16 MXU operands / storage, f32 accumulation

    key = jax.random.PRNGKey(0)
    kx, kp = jax.random.split(key)
    x = jax.random.normal(kx, (B, num_features, T), jnp.float32)
    params = init_encoder_params(kp, num_features, block_channels, kernel_width)

    # One-time (outside jit) weight preprocessing -> kernel-ready stacked arrays.
    prepped = prepare_encoder_params(params, kernel_width, compute_dtype=compute_dtype)

    fwd = jax.jit(
        functools.partial(
            encoder_forward_pallas,
            kernel_width=kernel_width,
            dilation=dilation,
            compute_dtype=compute_dtype,
        )
    )
    out = jax.block_until_ready(fwd(x, prepped))

    ref = encoder_forward_ref(x, params, kernel_width, dilation)
    # bf16 MXU operands / inter-group storage (f32 residual/LN math) -> bf16 tolerance.
    np.testing.assert_allclose(np.asarray(out), np.asarray(ref),
                               rtol=2e-2, atol=3e-2)
    assert out.shape == (B, num_features, T)
    print("KERNEL_OK")
</pallas_src>

<mosaic_0001>
module attributes {stable_mosaic.version = 11 : i64} {
  func.func @kernel(%arg0: i32, %arg1: i32, %arg2: memref<1x16x16xbf16, #tpu.memory_space<vmem>>, %arg3: memref<2x3x16x16xbf16, #tpu.memory_space<vmem>>, %arg4: memref<2x1x16xf32, #tpu.memory_space<vmem>>, %arg5: memref<2x1x16xf32, #tpu.memory_space<vmem>>, %arg6: memref<2x1x16xf32, #tpu.memory_space<vmem>>, %arg7: memref<2x16x16xbf16, #tpu.memory_space<vmem>>, %arg8: memref<2x1x16xf32, #tpu.memory_space<vmem>>, %arg9: memref<2x16x16xbf16, #tpu.memory_space<vmem>>, %arg10: memref<2x1x16xf32, #tpu.memory_space<vmem>>, %arg11: memref<2x1x16xf32, #tpu.memory_space<vmem>>, %arg12: memref<2x1x16xf32, #tpu.memory_space<vmem>>, %arg13: memref<1x16x16xf32, #tpu.memory_space<vmem>>, %arg14: memref<2x20x16xbf16, #tpu.memory_space<vmem>>) attributes {dimension_semantics = [#tpu.dimension_semantics<parallel>, #tpu.dimension_semantics<arbitrary>], iteration_bounds = array<i64: 2, 1>, scalar_prefetch = 0 : i64, scratch_operands = 1 : i64, tpu.core_type = #tpu.core_type<tc>, window_params = [{transform_indices = @transform_0, window_bounds = array<i64: 1, 16, 16>}, {pipeline_mode = #tpu.pipeline_mode<synchronous>, transform_indices = @transform_1, window_bounds = array<i64: 2, 3, 16, 16>}, {pipeline_mode = #tpu.pipeline_mode<synchronous>, transform_indices = @transform_2, window_bounds = array<i64: 2, 1, 16>}, {pipeline_mode = #tpu.pipeline_mode<synchronous>, transform_indices = @transform_3, window_bounds = array<i64: 2, 1, 16>}, {pipeline_mode = #tpu.pipeline_mode<synchronous>, transform_indices = @transform_4, window_bounds = array<i64: 2, 1, 16>}, {pipeline_mode = #tpu.pipeline_mode<synchronous>, transform_indices = @transform_5, window_bounds = array<i64: 2, 16, 16>}, {pipeline_mode = #tpu.pipeline_mode<synchronous>, transform_indices = @transform_6, window_bounds = array<i64: 2, 1, 16>}, {pipeline_mode = #tpu.pipeline_mode<synchronous>, transform_indices = @transform_7, window_bounds = array<i64: 2, 16, 16>}, {pipeline_mode = #tpu.pipeline_mode<synchronous>, transform_indices = @transform_8, window_bounds = array<i64: 2, 1, 16>}, {pipeline_mode = #tpu.pipeline_mode<synchronous>, transform_indices = @transform_9, window_bounds = array<i64: 2, 1, 16>}, {pipeline_mode = #tpu.pipeline_mode<synchronous>, transform_indices = @transform_10, window_bounds = array<i64: 2, 1, 16>}, {transform_indices = @transform_11, window_bounds = array<i64: 1, 16, 16>}]} {
    %c0 = arith.constant 0 : index
    %c0_0 = arith.constant 0 : index
    %c0_1 = arith.constant 0 : index
    %0 = vector.load %arg2[%c0, %c0_0, %c0_1] : memref<1x16x16xbf16, #tpu.memory_space<vmem>>, vector<1x16x16xbf16>
    %1 = vector.shape_cast %0 : vector<1x16x16xbf16> to vector<16x16xbf16>
    %2 = arith.extf %1 : vector<16x16xbf16> to vector<16x16xf32>
    %3 = tpu.transpose %2, [1, 0] : vector<16x16xf32> -> vector<16x16xf32>
    %4 = arith.truncf %3 : vector<16x16xf32> to vector<16x16xbf16>
    %c0_i32 = arith.constant 0 : i32
    %5 = arith.cmpi eq, %arg1, %c0_i32 : i32
    %6 = arith.extui %5 : i1 to i32
    %c0_i32_2 = arith.constant 0 : i32
    %7 = arith.cmpi ne, %6, %c0_i32_2 : i32
    scf.if %7 {
      %cst_145 = arith.constant 0.000000e+00 : bf16
      %210 = vector.broadcast %cst_145 : bf16 to vector<4x16xbf16>
      %c0_146 = arith.constant 0 : index
      %c0_147 = arith.constant 0 : index
      %c0_148 = arith.constant 0 : index
      %211 = vector.load %arg14[%c0_146, %c0_147, %c0_148] : memref<2x20x16xbf16, #tpu.memory_space<vmem>>, vector<1x4x16xbf16>
      %212 = vector.shape_cast %211 : vector<1x4x16xbf16> to vector<4x16xbf16>
      %213 = vector.shape_cast %210 : vector<4x16xbf16> to vector<1x4x16xbf16>
      tpu.vector_store %arg14[%c0_146, %c0_147, %c0_148], %213 {strides = array<i32>} : memref<2x20x16xbf16, #tpu.memory_space<vmem>>, vector<1x4x16xbf16>,
    } else {
    }
    %c0_3 = arith.constant 0 : index
    %c4 = arith.constant 4 : index
    %c0_4 = arith.constant 0 : index
    %8 = vector.load %arg14[%c0_3, %c4, %c0_4] : memref<2x20x16xbf16, #tpu.memory_space<vmem>>, vector<1x16x16xbf16>
    %9 = vector.shape_cast %8 : vector<1x16x16xbf16> to vector<16x16xbf16>
    %10 = vector.shape_cast %4 : vector<16x16xbf16> to vector<1x16x16xbf16>
    tpu.vector_store %arg14[%c0_3, %c4, %c0_4], %10 {strides = array<i32>} : memref<2x20x16xbf16, #tpu.memory_space<vmem>>, vector<1x16x16xbf16>,
    %c0_5 = arith.constant 0 : index
    %c0_6 = arith.constant 0 : index
    %c0_7 = arith.constant 0 : index
    %c0_8 = arith.constant 0 : index
    %11 = vector.load %arg3[%c0_5, %c0_6, %c0_7, %c0_8] : memref<2x3x16x16xbf16, #tpu.memory_space<vmem>>, vector<1x1x16x16xbf16>
    %12 = vector.shape_cast %11 : vector<1x1x16x16xbf16> to vector<16x16xbf16>
    %cst = arith.constant dense<0.000000e+00> : vector<16x16xf32>
    %13 = tpu.matmul %4, %12, %cst {dimension_numbers = #tpu.dot_dimension_numbers<[1], [0], [0], [1], [0, 0, 1, 1], [], []>} : vector<16x16xbf16>, vector<16x16xbf16>, vector<16x16xf32> -> vector<16x16xf32>
    %c0_9 = arith.constant 0 : index
    %c2 = arith.constant 2 : index
    %c0_10 = arith.constant 0 : index
    %14 = vector.load %arg14[%c0_9, %c2, %c0_10] : memref<2x20x16xbf16, #tpu.memory_space<vmem>>, vector<1x16x16xbf16>
    %15 = vector.shape_cast %14 : vector<1x16x16xbf16> to vector<16x16xbf16>
    %c0_11 = arith.constant 0 : index
    %c1 = arith.constant 1 : index
    %c0_12 = arith.constant 0 : index
    %c0_13 = arith.constant 0 : index
    %16 = vector.load %arg3[%c0_11, %c1, %c0_12, %c0_13] : memref<2x3x16x16xbf16, #tpu.memory_space<vmem>>, vector<1x1x16x16xbf16>
    %17 = vector.shape_cast %16 : vector<1x1x16x16xbf16> to vector<16x16xbf16>
    %cst_14 = arith.constant dense<0.000000e+00> : vector<16x16xf32>
    %18 = tpu.matmul %15, %17, %cst_14 {dimension_numbers = #tpu.dot_dimension_numbers<[1], [0], [0], [1], [0, 0, 1, 1], [], []>} : vector<16x16xbf16>, vector<16x16xbf16>, vector<16x16xf32> -> vector<16x16xf32>
    %19 = arith.addf %13, %18 : vector<16x16xf32>
    %c0_15 = arith.constant 0 : index
    %c0_16 = arith.constant 0 : index
    %c0_17 = arith.constant 0 : index
    %20 = vector.load %arg14[%c0_15, %c0_16, %c0_17] : memref<2x20x16xbf16, #tpu.memory_space<vmem>>, vector<1x16x16xbf16>
    %21 = vector.shape_cast %20 : vector<1x16x16xbf16> to vector<16x16xbf16>
    %c0_18 = arith.constant 0 : index
    %c2_19 = arith.constant 2 : index
    %c0_20 = arith.constant 0 : index
    %c0_21 = arith.constant 0 : index
    %22 = vector.load %arg3[%c0_18, %c2_19, %c0_20, %c0_21] : memref<2x3x16x16xbf16, #tpu.memory_space<vmem>>, vector<1x1x16x16xbf16>
    %23 = vector.shape_cast %22 : vector<1x1x16x16xbf16> to vector<16x16xbf16>
    %cst_22 = arith.constant dense<0.000000e+00> : vector<16x16xf32>
    %24 = tpu.matmul %21, %23, %cst_22 {dimension_numbers = #tpu.dot_dimension_numbers<[1], [0], [0], [1], [0, 0, 1, 1], [], []>} : vector<16x16xbf16>, vector<16x16xbf16>, vector<16x16xf32> -> vector<16x16xf32>
    %25 = arith.addf %19, %24 : vector<16x16xf32>
    %c0_23 = arith.constant 0 : index
    %c16 = arith.constant 16 : index
    %c0_24 = arith.constant 0 : index
    %26 = vector.load %arg14[%c0_23, %c16, %c0_24] : memref<2x20x16xbf16, #tpu.memory_space<vmem>>, vector<1x4x16xbf16>
    %27 = vector.shape_cast %26 : vector<1x4x16xbf16> to vector<4x16xbf16>
    %c0_25 = arith.constant 0 : index
    %c0_26 = arith.constant 0 : index
    %c0_27 = arith.constant 0 : index
    %28 = vector.load %arg14[%c0_25, %c0_26, %c0_27] : memref<2x20x16xbf16, #tpu.memory_space<vmem>>, vector<1x4x16xbf16>
    %29 = vector.shape_cast %28 : vector<1x4x16xbf16> to vector<4x16xbf16>
    %30 = vector.shape_cast %27 : vector<4x16xbf16> to vector<1x4x16xbf16>
    tpu.vector_store %arg14[%c0_25, %c0_26, %c0_27], %30 {strides = array<i32>} : memref<2x20x16xbf16, #tpu.memory_space<vmem>>, vector<1x4x16xbf16>,
    %c0_28 = arith.constant 0 : index
    %c0_29 = arith.constant 0 : index
    %c0_30 = arith.constant 0 : index
    %31 = vector.load %arg4[%c0_28, %c0_29, %c0_30] : memref<2x1x16xf32, #tpu.memory_space<vmem>>, vector<1x1x16xf32>
    %32 = vector.shape_cast %31 : vector<1x1x16xf32> to vector<1x16xf32>
    %33 = vector.broadcast %32 : vector<1x16xf32> to vector<16x16xf32>
    %34 = arith.addf %25, %33 : vector<16x16xf32>
    %cst_31 = arith.constant 0.000000e+00 : f32
    %35 = vector.broadcast %cst_31 : f32 to vector<16x16xf32>
    %36 = arith.maximumf %34, %35 : vector<16x16xf32>
    %37 = arith.addf %36, %3 : vector<16x16xf32>
    %c0_32 = arith.constant 0 : index
    %c0_33 = arith.constant 0 : index
    %c0_34 = arith.constant 0 : index
    %38 = vector.load %arg5[%c0_32, %c0_33, %c0_34] : memref<2x1x16xf32, #tpu.memory_space<vmem>>, vector<1x1x16xf32>
    %39 = vector.shape_cast %38 : vector<1x1x16xf32> to vector<1x16xf32>
    %c0_35 = arith.constant 0 : index
    %c0_36 = arith.constant 0 : index
    %c0_37 = arith.constant 0 : index
    %40 = vector.load %arg6[%c0_35, %c0_36, %c0_37] : memref<2x1x16xf32, #tpu.memory_space<vmem>>, vector<1x1x16xf32>
    %41 = vector.shape_cast %40 : vector<1x1x16xf32> to vector<1x16xf32>
    %cst_38 = arith.constant dense<0.000000e+00> : vector<16xf32>
    %42 = vector.multi_reduction <add>, %37, %cst_38 [1] : vector<16x16xf32> to vector<16xf32>
    %43 = vector.shape_cast %42 : vector<16xf32> to vector<16x1xf32>
    %cst_39 = arith.constant 1.600000e+01 : f32
    %44 = vector.broadcast %cst_39 : f32 to vector<16x1xf32>
    %45 = arith.divf %43, %44 : vector<16x1xf32>
    %46 = vector.broadcast %45 : vector<16x1xf32> to vector<16x16xf32>
    %47 = arith.subf %37, %46 : vector<16x16xf32>
    %48 = arith.mulf %47, %47 : vector<16x16xf32>
    %cst_40 = arith.constant dense<0.000000e+00> : vector<16xf32>
    %49 = vector.multi_reduction <add>, %48, %cst_40 [1] : vector<16x16xf32> to vector<16xf32>
    %50 = vector.shape_cast %49 : vector<16xf32> to vector<16x1xf32>
    %cst_41 = arith.constant 1.600000e+01 : f32
    %51 = vector.broadcast %cst_41 : f32 to vector<16x1xf32>
    %52 = arith.divf %50, %51 : vector<16x1xf32>
    %cst_42 = arith.constant 9.99999974E-6 : f32
    %53 = vector.broadcast %cst_42 : f32 to vector<16x1xf32>
    %54 = arith.addf %52, %53 : vector<16x1xf32>
    %55 = math.rsqrt %54 : vector<16x1xf32>
    %56 = vector.broadcast %55 : vector<16x1xf32> to vector<16x16xf32>
    %57 = arith.mulf %47, %56 : vector<16x16xf32>
    %58 = vector.broadcast %39 : vector<1x16xf32> to vector<16x16xf32>
    %59 = arith.mulf %57, %58 : vector<16x16xf32>
    %60 = vector.broadcast %41 : vector<1x16xf32> to vector<16x16xf32>
    %61 = arith.addf %59, %60 : vector<16x16xf32>
    %62 = arith.truncf %61 : vector<16x16xf32> to vector<16x16xbf16>
    %c0_43 = arith.constant 0 : index
    %c0_44 = arith.constant 0 : index
    %c0_45 = arith.constant 0 : index
    %63 = vector.load %arg7[%c0_43, %c0_44, %c0_45] : memref<2x16x16xbf16, #tpu.memory_space<vmem>>, vector<1x16x16xbf16>
    %64 = vector.shape_cast %63 : vector<1x16x16xbf16> to vector<16x16xbf16>
    %cst_46 = arith.constant dense<0.000000e+00> : vector<16x16xf32>
    %65 = tpu.matmul %62, %64, %cst_46 {dimension_numbers = #tpu.dot_dimension_numbers<[1], [0], [0], [1], [0, 0, 1, 1], [], []>} : vector<16x16xbf16>, vector<16x16xbf16>, vector<16x16xf32> -> vector<16x16xf32>
    %c0_47 = arith.constant 0 : index
    %c0_48 = arith.constant 0 : index
    %c0_49 = arith.constant 0 : index
    %66 = vector.load %arg8[%c0_47, %c0_48, %c0_49] : memref<2x1x16xf32, #tpu.memory_space<vmem>>, vector<1x1x16xf32>
    %67 = vector.shape_cast %66 : vector<1x1x16xf32> to vector<1x16xf32>
    %68 = vector.broadcast %67 : vector<1x16xf32> to vector<16x16xf32>
    %69 = arith.addf %65, %68 : vector<16x16xf32>
    %cst_50 = arith.constant 0.000000e+00 : f32
    %70 = vector.broadcast %cst_50 : f32 to vector<16x16xf32>
    %71 = arith.maximumf %69, %70 : vector<16x16xf32>
    %72 = arith.truncf %71 : vector<16x16xf32> to vector<16x16xbf16>
    %c0_51 = arith.constant 0 : index
    %c0_52 = arith.constant 0 : index
    %c0_53 = arith.constant 0 : index
    %73 = vector.load %arg9[%c0_51, %c0_52, %c0_53] : memref<2x16x16xbf16, #tpu.memory_space<vmem>>, vector<1x16x16xbf16>
    %74 = vector.shape_cast %73 : vector<1x16x16xbf16> to vector<16x16xbf16>
    %cst_54 = arith.constant dense<0.000000e+00> : vector<16x16xf32>
    %75 = tpu.matmul %72, %74, %cst_54 {dimension_numbers = #tpu.dot_dimension_numbers<[1], [0], [0], [1], [0, 0, 1, 1], [], []>} : vector<16x16xbf16>, vector<16x16xbf16>, vector<16x16xf32> -> vector<16x16xf32>
    %c0_55 = arith.constant 0 : index
    %c0_56 = arith.constant 0 : index
    %c0_57 = arith.constant 0 : index
    %76 = vector.load %arg10[%c0_55, %c0_56, %c0_57] : memref<2x1x16xf32, #tpu.memory_space<vmem>>, vector<1x1x16xf32>
    %77 = vector.shape_cast %76 : vector<1x1x16xf32> to vector<1x16xf32>
    %78 = vector.broadcast %77 : vector<1x16xf32> to vector<16x16xf32>
    %79 = arith.addf %75, %78 : vector<16x16xf32>
    %80 = arith.addf %79, %61 : vector<16x16xf32>
    %c0_58 = arith.constant 0 : index
    %c0_59 = arith.constant 0 : index
    %c0_60 = arith.constant 0 : index
    %81 = vector.load %arg11[%c0_58, %c0_59, %c0_60] : memref<2x1x16xf32, #tpu.memory_space<vmem>>, vector<1x1x16xf32>
    %82 = vector.shape_cast %81 : vector<1x1x16xf32> to vector<1x16xf32>
    %c0_61 = arith.constant 0 : index
    %c0_62 = arith.constant 0 : index
    %c0_63 = arith.constant 0 : index
    %83 = vector.load %arg12[%c0_61, %c0_62, %c0_63] : memref<2x1x16xf32, #tpu.memory_space<vmem>>, vector<1x1x16xf32>
    %84 = vector.shape_cast %83 : vector<1x1x16xf32> to vector<1x16xf32>
    %cst_64 = arith.constant dense<0.000000e+00> : vector<16xf32>
    %85 = vector.multi_reduction <add>, %80, %cst_64 [1] : vector<16x16xf32> to vector<16xf32>
    %86 = vector.shape_cast %85 : vector<16xf32> to vector<16x1xf32>
    %cst_65 = arith.constant 1.600000e+01 : f32
    %87 = vector.broadcast %cst_65 : f32 to vector<16x1xf32>
    %88 = arith.divf %86, %87 : vector<16x1xf32>
    %89 = vector.broadcast %88 : vector<16x1xf32> to vector<16x16xf32>
    %90 = arith.subf %80, %89 : vector<16x16xf32>
    %91 = arith.mulf %90, %90 : vector<16x16xf32>
    %cst_66 = arith.constant dense<0.000000e+00> : vector<16xf32>
    %92 = vector.multi_reduction <add>, %91, %cst_66 [1] : vector<16x16xf32> to vector<16xf32>
    %93 = vector.shape_cast %92 : vector<16xf32> to vector<16x1xf32>
    %cst_67 = arith.constant 1.600000e+01 : f32
    %94 = vector.broadcast %cst_67 : f32 to vector<16x1xf32>
    %95 = arith.divf %93, %94 : vector<16x1xf32>
    %cst_68 = arith.constant 9.99999974E-6 : f32
    %96 = vector.broadcast %cst_68 : f32 to vector<16x1xf32>
    %97 = arith.addf %95, %96 : vector<16x1xf32>
    %98 = math.rsqrt %97 : vector<16x1xf32>
    %99 = vector.broadcast %98 : vector<16x1xf32> to vector<16x16xf32>
    %100 = arith.mulf %90, %99 : vector<16x16xf32>
    %101 = vector.broadcast %82 : vector<1x16xf32> to vector<16x16xf32>
    %102 = arith.mulf %100, %101 : vector<16x16xf32>
    %103 = vector.broadcast %84 : vector<1x16xf32> to vector<16x16xf32>
    %104 = arith.addf %102, %103 : vector<16x16xf32>
    %105 = arith.truncf %104 : vector<16x16xf32> to vector<16x16xbf16>
    %c0_i32_69 = arith.constant 0 : i32
    %106 = arith.cmpi eq, %arg1, %c0_i32_69 : i32
    %107 = arith.extui %106 : i1 to i32
    %c0_i32_70 = arith.constant 0 : i32
    %108 = arith.cmpi ne, %107, %c0_i32_70 : i32
    scf.if %108 {
      %cst_145 = arith.constant 0.000000e+00 : bf16
      %210 = vector.broadcast %cst_145 : bf16 to vector<4x16xbf16>
      %c1_146 = arith.constant 1 : index
      %c0_147 = arith.constant 0 : index
      %c0_148 = arith.constant 0 : index
      %211 = vector.load %arg14[%c1_146, %c0_147, %c0_148] : memref<2x20x16xbf16, #tpu.memory_space<vmem>>, vector<1x4x16xbf16>
      %212 = vector.shape_cast %211 : vector<1x4x16xbf16> to vector<4x16xbf16>
      %213 = vector.shape_cast %210 : vector<4x16xbf16> to vector<1x4x16xbf16>
      tpu.vector_store %arg14[%c1_146, %c0_147, %c0_148], %213 {strides = array<i32>} : memref<2x20x16xbf16, #tpu.memory_space<vmem>>, vector<1x4x16xbf16>,
    } else {
    }
    %c1_71 = arith.constant 1 : index
    %c4_72 = arith.constant 4 : index
    %c0_73 = arith.constant 0 : index
    %109 = vector.load %arg14[%c1_71, %c4_72, %c0_73] : memref<2x20x16xbf16, #tpu.memory_space<vmem>>, vector<1x16x16xbf16>
    %110 = vector.shape_cast %109 : vector<1x16x16xbf16> to vector<16x16xbf16>
    %111 = vector.shape_cast %105 : vector<16x16xbf16> to vector<1x16x16xbf16>
    tpu.vector_store %arg14[%c1_71, %c4_72, %c0_73], %111 {strides = array<i32>} : memref<2x20x16xbf16, #tpu.memory_space<vmem>>, vector<1x16x16xbf16>,
    %c1_74 = arith.constant 1 : index
    %c0_75 = arith.constant 0 : index
    %c0_76 = arith.constant 0 : index
    %c0_77 = arith.constant 0 : index
    %112 = vector.load %arg3[%c1_74, %c0_75, %c0_76, %c0_77] : memref<2x3x16x16xbf16, #tpu.memory_space<vmem>>, vector<1x1x16x16xbf16>
    %113 = vector.shape_cast %112 : vector<1x1x16x16xbf16> to vector<16x16xbf16>
    %cst_78 = arith.constant dense<0.000000e+00> : vector<16x16xf32>
    %114 = tpu.matmul %105, %113, %cst_78 {dimension_numbers = #tpu.dot_dimension_numbers<[1], [0], [0], [1], [0, 0, 1, 1], [], []>} : vector<16x16xbf16>, vector<16x16xbf16>, vector<16x16xf32> -> vector<16x16xf32>
    %c1_79 = arith.constant 1 : index
    %c2_80 = arith.constant 2 : index
    %c0_81 = arith.constant 0 : index
    %115 = vector.load %arg14[%c1_79, %c2_80, %c0_81] : memref<2x20x16xbf16, #tpu.memory_space<vmem>>, vector<1x16x16xbf16>
    %116 = vector.shape_cast %115 : vector<1x16x16xbf16> to vector<16x16xbf16>
    %c1_82 = arith.constant 1 : index
    %c1_83 = arith.constant 1 : index
    %c0_84 = arith.constant 0 : index
    %c0_85 = arith.constant 0 : index
    %117 = vector.load %arg3[%c1_82, %c1_83, %c0_84, %c0_85] : memref<2x3x16x16xbf16, #tpu.memory_space<vmem>>, vector<1x1x16x16xbf16>
    %118 = vector.shape_cast %117 : vector<1x1x16x16xbf16> to vector<16x16xbf16>
    %cst_86 = arith.constant dense<0.000000e+00> : vector<16x16xf32>
    %119 = tpu.matmul %116, %118, %cst_86 {dimension_numbers = #tpu.dot_dimension_numbers<[1], [0], [0], [1], [0, 0, 1, 1], [], []>} : vector<16x16xbf16>, vector<16x16xbf16>, vector<16x16xf32> -> vector<16x16xf32>
    %120 = arith.addf %114, %119 : vector<16x16xf32>
    %c1_87 = arith.constant 1 : index
    %c0_88 = arith.constant 0 : index
    %c0_89 = arith.constant 0 : index
    %121 = vector.load %arg14[%c1_87, %c0_88, %c0_89] : memref<2x20x16xbf16, #tpu.memory_space<vmem>>, vector<1x16x16xbf16>
    %122 = vector.shape_cast %121 : vector<1x16x16xbf16> to vector<16x16xbf16>
    %c1_90 = arith.constant 1 : index
    %c2_91 = arith.constant 2 : index
    %c0_92 = arith.constant 0 : index
    %c0_93 = arith.constant 0 : index
    %123 = vector.load %arg3[%c1_90, %c2_91, %c0_92, %c0_93] : memref<2x3x16x16xbf16, #tpu.memory_space<vmem>>, vector<1x1x16x16xbf16>
    %124 = vector.shape_cast %123 : vector<1x1x16x16xbf16> to vector<16x16xbf16>
    %cst_94 = arith.constant dense<0.000000e+00> : vector<16x16xf32>
    %125 = tpu.matmul %122, %124, %cst_94 {dimension_numbers = #tpu.dot_dimension_numbers<[1], [0], [0], [1], [0, 0, 1, 1], [], []>} : vector<16x16xbf16>, vector<16x16xbf16>, vector<16x16xf32> -> vector<16x16xf32>
    %126 = arith.addf %120, %125 : vector<16x16xf32>
    %c1_95 = arith.constant 1 : index
    %c16_96 = arith.constant 16 : index
    %c0_97 = arith.constant 0 : index
    %127 = vector.load %arg14[%c1_95, %c16_96, %c0_97] : memref<2x20x16xbf16, #tpu.memory_space<vmem>>, vector<1x4x16xbf16>
    %128 = vector.shape_cast %127 : vector<1x4x16xbf16> to vector<4x16xbf16>
    %c1_98 = arith.constant 1 : index
    %c0_99 = arith.constant 0 : index
    %c0_100 = arith.constant 0 : index
    %129 = vector.load %arg14[%c1_98, %c0_99, %c0_100] : memref<2x20x16xbf16, #tpu.memory_space<vmem>>, vector<1x4x16xbf16>
    %130 = vector.shape_cast %129 : vector<1x4x16xbf16> to vector<4x16xbf16>
    %131 = vector.shape_cast %128 : vector<4x16xbf16> to vector<1x4x16xbf16>
    tpu.vector_store %arg14[%c1_98, %c0_99, %c0_100], %131 {strides = array<i32>} : memref<2x20x16xbf16, #tpu.memory_space<vmem>>, vector<1x4x16xbf16>,
    %c1_101 = arith.constant 1 : index
    %c0_102 = arith.constant 0 : index
    %c0_103 = arith.constant 0 : index
    %132 = vector.load %arg4[%c1_101, %c0_102, %c0_103] : memref<2x1x16xf32, #tpu.memory_space<vmem>>, vector<1x1x16xf32>
    %133 = vector.shape_cast %132 : vector<1x1x16xf32> to vector<1x16xf32>
    %134 = vector.broadcast %133 : vector<1x16xf32> to vector<16x16xf32>
    %135 = arith.addf %126, %134 : vector<16x16xf32>
    %cst_104 = arith.constant 0.000000e+00 : f32
    %136 = vector.broadcast %cst_104 : f32 to vector<16x16xf32>
    %137 = arith.maximumf %135, %136 : vector<16x16xf32>
    %138 = arith.addf %137, %104 : vector<16x16xf32>
    %c1_105 = arith.constant 1 : index
    %c0_106 = arith.constant 0 : index
    %c0_107 = arith.constant 0 : index
    %139 = vector.load %arg5[%c1_105, %c0_106, %c0_107] : memref<2x1x16xf32, #tpu.memory_space<vmem>>, vector<1x1x16xf32>
    %140 = vector.shape_cast %139 : vector<1x1x16xf32> to vector<1x16xf32>
    %c1_108 = arith.constant 1 : index
    %c0_109 = arith.constant 0 : index
    %c0_110 = arith.constant 0 : index
    %141 = vector.load %arg6[%c1_108, %c0_109, %c0_110] : memref<2x1x16xf32, #tpu.memory_space<vmem>>, vector<1x1x16xf32>
    %142 = vector.shape_cast %141 : vector<1x1x16xf32> to vector<1x16xf32>
    %cst_111 = arith.constant dense<0.000000e+00> : vector<16xf32>
    %143 = vector.multi_reduction <add>, %138, %cst_111 [1] : vector<16x16xf32> to vector<16xf32>
    %144 = vector.shape_cast %143 : vector<16xf32> to vector<16x1xf32>
    %cst_112 = arith.constant 1.600000e+01 : f32
    %145 = vector.broadcast %cst_112 : f32 to vector<16x1xf32>
    %146 = arith.divf %144, %145 : vector<16x1xf32>
    %147 = vector.broadcast %146 : vector<16x1xf32> to vector<16x16xf32>
    %148 = arith.subf %138, %147 : vector<16x16xf32>
    %149 = arith.mulf %148, %148 : vector<16x16xf32>
    %cst_113 = arith.constant dense<0.000000e+00> : vector<16xf32>
    %150 = vector.multi_reduction <add>, %149, %cst_113 [1] : vector<16x16xf32> to vector<16xf32>
    %151 = vector.shape_cast %150 : vector<16xf32> to vector<16x1xf32>
    %cst_114 = arith.constant 1.600000e+01 : f32
    %152 = vector.broadcast %cst_114 : f32 to vector<16x1xf32>
    %153 = arith.divf %151, %152 : vector<16x1xf32>
    %cst_115 = arith.constant 9.99999974E-6 : f32
    %154 = vector.broadcast %cst_115 : f32 to vector<16x1xf32>
    %155 = arith.addf %153, %154 : vector<16x1xf32>
    %156 = math.rsqrt %155 : vector<16x1xf32>
    %157 = vector.broadcast %156 : vector<16x1xf32> to vector<16x16xf32>
    %158 = arith.mulf %148, %157 : vector<16x16xf32>
    %159 = vector.broadcast %140 : vector<1x16xf32> to vector<16x16xf32>
    %160 = arith.mulf %158, %159 : vector<16x16xf32>
    %161 = vector.broadcast %142 : vector<1x16xf32> to vector<16x16xf32>
    %162 = arith.addf %160, %161 : vector<16x16xf32>
    %163 = arith.truncf %162 : vector<16x16xf32> to vector<16x16xbf16>
    %c1_116 = arith.constant 1 : index
    %c0_117 = arith.constant 0 : index
    %c0_118 = arith.constant 0 : index
    %164 = vector.load %arg7[%c1_116, %c0_117, %c0_118] : memref<2x16x16xbf16, #tpu.memory_space<vmem>>, vector<1x16x16xbf16>
    %165 = vector.shape_cast %164 : vector<1x16x16xbf16> to vector<16x16xbf16>
    %cst_119 = arith.constant dense<0.000000e+00> : vector<16x16xf32>
    %166 = tpu.matmul %163, %165, %cst_119 {dimension_numbers = #tpu.dot_dimension_numbers<[1], [0], [0], [1], [0, 0, 1, 1], [], []>} : vector<16x16xbf16>, vector<16x16xbf16>, vector<16x16xf32> -> vector<16x16xf32>
    %c1_120 = arith.constant 1 : index
    %c0_121 = arith.constant 0 : index
    %c0_122 = arith.constant 0 : index
    %167 = vector.load %arg8[%c1_120, %c0_121, %c0_122] : memref<2x1x16xf32, #tpu.memory_space<vmem>>, vector<1x1x16xf32>
    %168 = vector.shape_cast %167 : vector<1x1x16xf32> to vector<1x16xf32>
    %169 = vector.broadcast %168 : vector<1x16xf32> to vector<16x16xf32>
    %170 = arith.addf %166, %169 : vector<16x16xf32>
    %cst_123 = arith.constant 0.000000e+00 : f32
    %171 = vector.broadcast %cst_123 : f32 to vector<16x16xf32>
    %172 = arith.maximumf %170, %171 : vector<16x16xf32>
    %173 = arith.truncf %172 : vector<16x16xf32> to vector<16x16xbf16>
    %c1_124 = arith.constant 1 : index
    %c0_125 = arith.constant 0 : index
    %c0_126 = arith.constant 0 : index
    %174 = vector.load %arg9[%c1_124, %c0_125, %c0_126] : memref<2x16x16xbf16, #tpu.memory_space<vmem>>, vector<1x16x16xbf16>
    %175 = vector.shape_cast %174 : vector<1x16x16xbf16> to vector<16x16xbf16>
    %cst_127 = arith.constant dense<0.000000e+00> : vector<16x16xf32>
    %176 = tpu.matmul %173, %175, %cst_127 {dimension_numbers = #tpu.dot_dimension_numbers<[1], [0], [0], [1], [0, 0, 1, 1], [], []>} : vector<16x16xbf16>, vector<16x16xbf16>, vector<16x16xf32> -> vector<16x16xf32>
    %c1_128 = arith.constant 1 : index
    %c0_129 = arith.constant 0 : index
    %c0_130 = arith.constant 0 : index
    %177 = vector.load %arg10[%c1_128, %c0_129, %c0_130] : memref<2x1x16xf32, #tpu.memory_space<vmem>>, vector<1x1x16xf32>
    %178 = vector.shape_cast %177 : vector<1x1x16xf32> to vector<1x16xf32>
    %179 = vector.broadcast %178 : vector<1x16xf32> to vector<16x16xf32>
    %180 = arith.addf %176, %179 : vector<16x16xf32>
    %181 = arith.addf %180, %162 : vector<16x16xf32>
    %c1_131 = arith.constant 1 : index
    %c0_132 = arith.constant 0 : index
    %c0_133 = arith.constant 0 : index
    %182 = vector.load %arg11[%c1_131, %c0_132, %c0_133] : memref<2x1x16xf32, #tpu.memory_space<vmem>>, vector<1x1x16xf32>
    %183 = vector.shape_cast %182 : vector<1x1x16xf32> to vector<1x16xf32>
    %c1_134 = arith.constant 1 : index
    %c0_135 = arith.constant 0 : index
    %c0_136 = arith.constant 0 : index
    %184 = vector.load %arg12[%c1_134, %c0_135, %c0_136] : memref<2x1x16xf32, #tpu.memory_space<vmem>>, vector<1x1x16xf32>
    %185 = vector.shape_cast %184 : vector<1x1x16xf32> to vector<1x16xf32>
    %cst_137 = arith.constant dense<0.000000e+00> : vector<16xf32>
    %186 = vector.multi_reduction <add>, %181, %cst_137 [1] : vector<16x16xf32> to vector<16xf32>
    %187 = vector.shape_cast %186 : vector<16xf32> to vector<16x1xf32>
    %cst_138 = arith.constant 1.600000e+01 : f32
    %188 = vector.broadcast %cst_138 : f32 to vector<16x1xf32>
    %189 = arith.divf %187, %188 : vector<16x1xf32>
    %190 = vector.broadcast %189 : vector<16x1xf32> to vector<16x16xf32>
    %191 = arith.subf %181, %190 : vector<16x16xf32>
    %192 = arith.mulf %191, %191 : vector<16x16xf32>
    %cst_139 = arith.constant dense<0.000000e+00> : vector<16xf32>
    %193 = vector.multi_reduction <add>, %192, %cst_139 [1] : vector<16x16xf32> to vector<16xf32>
    %194 = vector.shape_cast %193 : vector<16xf32> to vector<16x1xf32>
    %cst_140 = arith.constant 1.600000e+01 : f32
    %195 = vector.broadcast %cst_140 : f32 to vector<16x1xf32>
    %196 = arith.divf %194, %195 : vector<16x1xf32>
    %cst_141 = arith.constant 9.99999974E-6 : f32
    %197 = vector.broadcast %cst_141 : f32 to vector<16x1xf32>
    %198 = arith.addf %196, %197 : vector<16x1xf32>
    %199 = math.rsqrt %198 : vector<16x1xf32>
    %200 = vector.broadcast %199 : vector<16x1xf32> to vector<16x16xf32>
    %201 = arith.mulf %191, %200 : vector<16x16xf32>
    %202 = vector.broadcast %183 : vector<1x16xf32> to vector<16x16xf32>
    %203 = arith.mulf %201, %202 : vector<16x16xf32>
    %204 = vector.broadcast %185 : vector<1x16xf32> to vector<16x16xf32>
    %205 = arith.addf %203, %204 : vector<16x16xf32>
    %206 = tpu.transpose %205, [1, 0] : vector<16x16xf32> -> vector<16x16xf32>
    %c0_142 = arith.constant 0 : index
    %c0_143 = arith.constant 0 : index
    %c0_144 = arith.constant 0 : index
    %207 = vector.load %arg13[%c0_142, %c0_143, %c0_144] : memref<1x16x16xf32, #tpu.memory_space<vmem>>, vector<1x16x16xf32>
    %208 = vector.shape_cast %207 : vector<1x16x16xf32> to vector<16x16xf32>
    %209 = vector.shape_cast %206 : vector<16x16xf32> to vector<1x16x16xf32>
    tpu.vector_store %arg13[%c0_142, %c0_143, %c0_144], %209 {strides = array<i32>} : memref<1x16x16xf32, #tpu.memory_space<vmem>>, vector<1x16x16xf32>,
    return
  }
  func.func @transform_0(%arg0: i32, %arg1: i32) -> (i32, i32, i32) {
    %c0_i32 = arith.constant 0 : i32
    %c0_i32_0 = arith.constant 0 : i32
    return %arg0, %c0_i32, %arg1 : i32, i32, i32
  }
  func.func @transform_1(%arg0: i32, %arg1: i32) -> (i32, i32, i32, i32) {
    %c0_i32 = arith.constant 0 : i32
    %c0_i32_0 = arith.constant 0 : i32
    %c0_i32_1 = arith.constant 0 : i32
    %c0_i32_2 = arith.constant 0 : i32
    %c0_i32_3 = arith.constant 0 : i32
    return %c0_i32, %c0_i32_0, %c0_i32_1, %c0_i32_2 : i32, i32, i32, i32
  }
  func.func @transform_2(%arg0: i32, %arg1: i32) -> (i32, i32, i32) {
    %c0_i32 = arith.constant 0 : i32
    %c0_i32_0 = arith.constant 0 : i32
    %c0_i32_1 = arith.constant 0 : i32
    %c0_i32_2 = arith.constant 0 : i32
    return %c0_i32, %c0_i32_0, %c0_i32_1 : i32, i32, i32
  }
  func.func @transform_3(%arg0: i32, %arg1: i32) -> (i32, i32, i32) {
    %c0_i32 = arith.constant 0 : i32
    %c0_i32_0 = arith.constant 0 : i32
    %c0_i32_1 = arith.constant 0 : i32
    %c0_i32_2 = arith.constant 0 : i32
    return %c0_i32, %c0_i32_0, %c0_i32_1 : i32, i32, i32
  }
  func.func @transform_4(%arg0: i32, %arg1: i32) -> (i32, i32, i32) {
    %c0_i32 = arith.constant 0 : i32
    %c0_i32_0 = arith.constant 0 : i32
    %c0_i32_1 = arith.constant 0 : i32
    %c0_i32_2 = arith.constant 0 : i32
    return %c0_i32, %c0_i32_0, %c0_i32_1 : i32, i32, i32
  }
  func.func @transform_5(%arg0: i32, %arg1: i32) -> (i32, i32, i32) {
    %c0_i32 = arith.constant 0 : i32
    %c0_i32_0 = arith.constant 0 : i32
    %c0_i32_1 = arith.constant 0 : i32
    %c0_i32_2 = arith.constant 0 : i32
    return %c0_i32, %c0_i32_0, %c0_i32_1 : i32, i32, i32
  }
  func.func @transform_6(%arg0: i32, %arg1: i32) -> (i32, i32, i32) {
    %c0_i32 = arith.constant 0 : i32
    %c0_i32_0 = arith.constant 0 : i32
    %c0_i32_1 = arith.constant 0 : i32
    %c0_i32_2 = arith.constant 0 : i32
    return %c0_i32, %c0_i32_0, %c0_i32_1 : i32, i32, i32
  }
  func.func @transform_7(%arg0: i32, %arg1: i32) -> (i32, i32, i32) {
    %c0_i32 = arith.constant 0 : i32
    %c0_i32_0 = arith.constant 0 : i32
    %c0_i32_1 = arith.constant 0 : i32
    %c0_i32_2 = arith.constant 0 : i32
    return %c0_i32, %c0_i32_0, %c0_i32_1 : i32, i32, i32
  }
  func.func @transform_8(%arg0: i32, %arg1: i32) -> (i32, i32, i32) {
    %c0_i32 = arith.constant 0 : i32
    %c0_i32_0 = arith.constant 0 : i32
    %c0_i32_1 = arith.constant 0 : i32
    %c0_i32_2 = arith.constant 0 : i32
    return %c0_i32, %c0_i32_0, %c0_i32_1 : i32, i32, i32
  }
  func.func @transform_9(%arg0: i32, %arg1: i32) -> (i32, i32, i32) {
    %c0_i32 = arith.constant 0 : i32
    %c0_i32_0 = arith.constant 0 : i32
    %c0_i32_1 = arith.constant 0 : i32
    %c0_i32_2 = arith.constant 0 : i32
    return %c0_i32, %c0_i32_0, %c0_i32_1 : i32, i32, i32
  }
  func.func @transform_10(%arg0: i32, %arg1: i32) -> (i32, i32, i32) {
    %c0_i32 = arith.constant 0 : i32
    %c0_i32_0 = arith.constant 0 : i32
    %c0_i32_1 = arith.constant 0 : i32
    %c0_i32_2 = arith.constant 0 : i32
    return %c0_i32, %c0_i32_0, %c0_i32_1 : i32, i32, i32
  }
  func.func @transform_11(%arg0: i32, %arg1: i32) -> (i32, i32, i32) {
    %c0_i32 = arith.constant 0 : i32
    %c0_i32_0 = arith.constant 0 : i32
    return %arg0, %c0_i32, %arg1 : i32, i32, i32
  }
}

</mosaic_0001>

<bundles_post_ra>
// kernel: encoder_forward_pallas.1
= control target key start
LH: loop header
LB: loop body
LE: loop exit
PB: predicated region body
PF: predicated region fallthrough
CT: control target
= control target key end

     0   :  { %s2291_s0 = inlined_call_operand.vmem [shape: bf16[2,16,16], index: 0, kind: input, shape index: {}]   ;;  %s2292_s1 = inlined_call_operand.vmem [shape: bf16[2,3,16,16], index: 1, kind: input, shape index: {}]   ;;  %s2293_s2 = inlined_call_operand.vmem [shape: f32[2,1,16], index: 2, kind: input, shape index: {}]   ;;  %s2294_s3 = inlined_call_operand.vmem [shape: f32[2,1,16], index: 3, kind: input, shape index: {}]   ;;  %s2295_s4 = inlined_call_operand.vmem [shape: f32[2,1,16], index: 4, kind: input, shape index: {}]   ;;  %s2296_s5 = inlined_call_operand.hbm [shape: bf16[2,16,16], index: 5, kind: input, shape index: {}]   ;;  %s2297_s6 = inlined_call_operand.hbm [shape: f32[2,1,16], index: 6, kind: input, shape index: {}]   ;;  %s2298_s7 = inlined_call_operand.hbm [shape: bf16[2,16,16], index: 7, kind: input, shape index: {}]   ;;  %s2299_s8 = inlined_call_operand.hbm [shape: f32[2,1,16], index: 8, kind: input, shape index: {}]   ;;  %s2300_s9 = inlined_call_operand.hbm [shape: f32[2,1,16], index: 9, kind: input, shape index: {}]   ;;  %s2301_s10 = inlined_call_operand.hbm [shape: f32[2,1,16], index: 10, kind: input, shape index: {}]   ;;  %s2302_s11 = inlined_call_operand.hbm [shape: f32[2,16,16], index: 11, kind: output, shape index: {}]  }
   0x1   :  { %2312 = sst [smem:[#allocation26_spill]] %s2296_s5 }
   0x2   :  { %2313 = sst [smem:[#allocation27_spill]] %s2297_s6 }
   0x3   :  { %2314 = sst [smem:[#allocation28_spill]] %s2298_s7 }
   0x4   :  { %2315 = sst [smem:[#allocation29_spill]] %s2299_s8 }
   0x5   :  { %16 = vsyncpa [#allocation4], 0 }
   0x6   :  { %17 = vsyncpa [#allocation7], 0 }
   0x7   :  { %18 = vsyncpa [#allocation10], 0 }
   0x8   :  { %19 = vsyncpa [#allocation13], 0 }
   0x9   :  { %20 = vsyncpa [#allocation5], 0 }
   0xa   :  { %22 = vsyncpa [#allocation5 + $0x1], 0  ;;  %s2016_s17 = smov 0   ;;  %s2018_s18 = smov 0  }
   0xb   :  { %s2020_s19 = smov 0   ;;  %s2022_s20 = smov 0  }
   0xc   :  { %s2024_s21 = smov 0   ;;  %s2026_s22 = smov 0  }
   0xd LB: > { %2316 = sst [smem:[#allocation20_spill]] %s1920_s17  ;;  %s1385_s23 = sadd.s32 4294967295, %s1940_s22   ;;  %s1940_s22 = sphi %s2026_s22, %s28_s22   ;;  %s1936_s21 = sphi %s2024_s21, %s2340_s21   ;;  %s1932_s20 = sphi %s2022_s20, %s2339_s20   ;;  %s1928_s19 = sphi %s2020_s19, %s2338_s19   ;;  %s1924_s18 = sphi %s2018_s18, %s2342_s18   ;;  %s1920_s17 = sphi %s2016_s17, %s2341_s17  }
   0xe   : > { %2317 = sst [smem:[#allocation21_spill]] %s1928_s19  ;;  %s1386_s24 = sadd.s32 4294967294, %s1940_s22  }
   0xf   : > { %2318 = sst [smem:[#allocation22_spill]] %s1936_s21  ;;  %s40_s25 = sadd.s32 1, %s1936_s21 }
  0x10   : > { %s287_s26 = sadd.s32 1, %s1928_s19  ;;  %p42_p0 = scmp.ge.s32.totalorder %s40_s25, 2 }
  0x11   : > { %p297_p1 = scmp.ne.s32.totalorder %s1928_s19, %s1924_s18  ;;  %p298_p2 = scmp.eq.s32.totalorder %s1385_s23, 1 }
  0x12   : > { %p303_p3 = scmp.ne.s32.totalorder %s1924_s18, %s1920_s17  ;;  %s2344_s25 = smov (%p42_p0, %s40_s25), 0 }
  0x13   : > { %2319 = sst [smem:[#allocation23_spill]] %s2344_s25  ;;  %p2056_p4 = por %p298_p2, %p297_p1 }
  0x14   : > { %p304_p5 = scmp.eq.s32.totalorder %s1386_s24, 1  ;;  %s282_s28 = ssub.s32 %s1936_s21, %s2344_s25 }
  0x15   : > { %p1387_p6 = scmp.ge.s32.totalorder %s1940_s22, 1  ;;  %p285_p7 = scmp.eq.s32.totalorder %s282_s28, 0 }
  0x16   : > { %p2063_p8 = por %p304_p5, %p303_p3  ;;  %p311_p9 = scmp.lt.s32.totalorder %s1940_s22, 3 }
  0x17   : > { %s2069_s30 = scalar_select %p285_p7, %s1928_s19, %s287_s26  }
  0x18   : > { %s2321_s29 = scalar_select %p2063_p8, 1, 0 }
  0x19   : > { %2323 = sst [smem:[#allocation25_spill]] %s2069_s30  ;;  %p2071_p10 = pnand %p1387_p6, %p311_p9 }
  0x1a   : > { %2322 = sst [smem:[#allocation24_spill]] %s2321_s29  ;;  %p2075_p11 = scmp.eq.s32.totalorder %s1385_s23, 0 }
  0x1b   : > { %s2326_s6 = sld [smem:[#allocation27_spill]]  ;;  %p1535_p12 = pneg %p2071_p10 }
  0x1c   : > { %s1942_s24 = smov [#allocation6]   ;;  %s2328_s8 = sld [smem:[#allocation29_spill]] }
  0x1d   : > { %s350_s26 = sshll.u32 %s1942_s24, 4  ;;  %p2086_p13 = pnand %p2075_p11, %p1535_p12  ;;  %s351_s26 = int_to_ptr.vmem [resolvable:$true] %s350_s26 }
  0x1e   : > { %s2308_s14 = smov 16   ;;  %s2310_s15 = smov 1  }
  0x1f   : > { %s1945_s24 = smov [#allocation9]   ;;  %s2329_s5 = sld [smem:[#allocation26_spill]] }
  0x20   : > { %s1946_s25 = smov [#allocation3]   ;;  %s2330_s7 = sld [smem:[#allocation28_spill]] }
  0x21   : > { %s348_s16 = sshll.u32 %s2326_s6, 4  ;;  %s378_s6 = sshll.u32 %s1945_s24, 4  ;;  %s349_s16 = int_to_ptr.hbm [resolvable:$true] %s348_s16  ;;  %s379_s6 = int_to_ptr.vmem [resolvable:$true] %s378_s6 }
  0x22   : > { %s376_s21 = sshll.u32 %s2328_s8, 4  ;;  %s336_s23 = sshll.u32 %s1946_s25, 4  ;;  %s377_s21 = int_to_ptr.hbm [resolvable:$true] %s376_s21  ;;  %s337_s23 = int_to_ptr.vmem [resolvable:$true] %s336_s23 }
  0x23   : > { %1541 = dma.hbm_to_vmem [thread:$0]  (!%p2086_p13), %s349_s16, 32, %s351_s26, [#allocation7], %s2308_s14, %s2308_s14, %s2310_s15  }
  0x24   : > { %1547 = dma.hbm_to_vmem [thread:$0]  (!%p2086_p13), %s377_s21, 32, %s379_s6, [#allocation10], %s2308_s14, %s2308_s14, %s2310_s15  }
  0x25   : > { %s334_s29 = sshll.u32 %s2329_s5, 4  ;;  %s1947_s8 = smov 64   ;;  %s335_s29 = int_to_ptr.hbm [resolvable:$true] %s334_s29 }
  0x26   : > { %s1948_s16 = smov 4   ;;  %s362_s19 = sshll.u32 %s2330_s7, 4  ;;  %s363_s19 = int_to_ptr.hbm [resolvable:$true] %s362_s19 }
  0x27   : > { %1538 = dma.hbm_to_vmem [thread:$0]  (!%p2086_p13), %s335_s29, 256, %s337_s23, [#allocation4], %s1947_s8, %s1947_s8, %s1948_s16  }
  0x28   : > { %s1949_s30 = smov [#allocation8]   ;;  %s390_s21 = sshll.u32 %s2300_s9, 4  ;;  %s391_s21 = int_to_ptr.hbm [resolvable:$true] %s390_s21 }
  0x29   : > { %s364_s5 = sshll.u32 %s1949_s30, 4  ;;  %s1950_s25 = smov [#allocation11]   ;;  %s365_s5 = int_to_ptr.vmem [resolvable:$true] %s364_s5 }
  0x2a   : > { %1544 = dma.hbm_to_vmem [thread:$0]  (!%p2086_p13), %s363_s19, 256, %s365_s5, [#allocation7], %s1947_s8, %s1947_s8, %s1948_s16  }
  0x2b   : > { %s392_s14 = sshll.u32 %s1950_s25, 4  ;;  %s404_s23 = sshll.u32 %s2301_s10, 4  ;;  %s393_s14 = int_to_ptr.vmem [resolvable:$true] %s392_s14  ;;  %s405_s23 = int_to_ptr.hbm [resolvable:$true] %s404_s23 }
  0x2c   : > { %s2331_s26 = smov 1   ;;  %s2332_s24 = smov 16  }
  0x2d   : > { %1550 = dma.hbm_to_vmem [thread:$0]  (!%p2086_p13), %s391_s21, 32, %s393_s14, [#allocation10], %s2332_s24, %s2332_s24, %s2331_s26  }
  0x2e   : > { %s1951_s30 = smov [#allocation12]   ;;  %433 = sbr.rel (%p2071_p10) target bundleno = 2366 (0x93e), region = 64 }
  0x2f   : > { %s406_s7 = sshll.u32 %s1951_s30, 4  ;;  %s407_s7 = int_to_ptr.vmem [resolvable:$true] %s406_s7 }
  0x30   : > { %1553 = dma.hbm_to_vmem [thread:$0]  (!%p2086_p13), %s405_s23, 32, %s407_s7, [#allocation13], %s2332_s24, %s2332_s24, %s2331_s26  }
  0x33   : > { %1899 = dma.done.wait (%p2075_p11), [#allocation4], 256  }
  0x34   : > { %1901 = vsyncadd (%p2075_p11), [#allocation4], 4294967040 }
  0x35   : > { %1903 = dma.done.wait (%p2075_p11), [#allocation7], 288  }
  0x36   : > { %1905 = vsyncadd (%p2075_p11), [#allocation7], 4294967008 }
  0x37   : > { %1907 = dma.done.wait (%p2075_p11), [#allocation10], 64  }
  0x38   : > { %1909 = vsyncadd (%p2075_p11), [#allocation10], 4294967232 }
  0x39   : > { %1911 = dma.done.wait (%p2075_p11), [#allocation13], 32  }
  0x3a   : > { %1913 = vsyncadd (%p2075_p11), [#allocation13], 4294967264  ;;  %p502_p0 = scmp.lt.s32.totalorder %s1932_s20, 1  ;;  %vm553_vm0 = vcmask 123904   ;;  %v1952_v3 = vmov 0   ;;  %v1490_v4 = vld [vmem:[%s2292_s1] sm:$0xff] }
  0x3b   : > { %554 = vst.msk [vmem:[#allocation2] sm:$0x3] %vm553_vm0, %v1952_v3  ;;  %637 = vmatpush.bf16.msra.mxu1 %v1490_v4  ;;  %v1494_v5 = vld [vmem:[%s2292_s1 + $0x10] sm:$0xff]  ;;  %v1492_v6 = vld [vmem:[%s2292_s1 + $0x8] sm:$0xff]  ;;  %vm568_vm1 = vcmask 125954   ;;  %vm557_vm2 = vcmask 1041408  }
  0x3c   : > { %s503_s5 = scalar_select %p502_p0, %s1932_s20, 1  ;;  %880 = vst.msk [vmem:[#allocation2 + $0xc] sm:$0x3] %vm553_vm0, %v1952_v3  ;;  %670 = vmatpush.bf16.msra.mxu2 %v1494_v5  ;;  %611 = vmatpush.bf16.msra.mxu0 %v1492_v6  ;;  %vm558_vm3 = vcmask 1045508   ;;  %vm570_vm5 = vcmask 125952   ;;  %vm600_vm6 = vcmask 130048  }
  0x3d   : > { %vm2164_vm4 = vmor %vm557_vm2, %vm558_vm3  ;;  %vm590_vm7 = vcmask 1046528   ;;  %v1634_v35 = vld [vmem:[%s2293_s2] ss:$0 sm:$0xff]  ;;  %v1953_v50 = vmov 16.0   ;;  %v1495_v3 = vld [vmem:[#allocation3] sm:$0xff]  ;;  %s499_s19 = sand.u32 1, %s1924_s18  }
  0x3e   : > { %s1489_s7 = sshll.u32 %s503_s5, 3  ;;  %1648 = vrcp.f32 %v1953_v50  ;;  %777 = vmatpush.bf16.msra.mxu3 %v1495_v3  ;;  %v1499_v3 = vld [vmem:[%s2292_s1 + $0x20] sm:$0xff]  ;;  %s1402_s6 = sshll.u32 %s499_s19, 4 }
  0x3f   : > { %s509_s12 = scalar_lea.vmem %s2291_s0, %s1489_s7  ;;  %931 = vmatpush.bf16.msrb.mxu1 %v1499_v3  ;;  %s1504_s21 = sshll.u32 %s1932_s20, 4 }
  0x40   : > { %v1506_v0 = vld [vmem:[%s509_s12] sm:$0xff]   ;;  %s1243_s23 = scalar_lea.hbm %s2302_s11, %s1504_s21  ;;  %s501_s26 = scalar_lea.vmem [#allocation14], %s1402_s6 }
  0x41   : > { %v1507_v1 = vunpack.c.l.bf16 %v1506_v0  ;;  %v1508_v2 = vunpack.c.h.bf16 %v1506_v0  ;;  %s1244_s24 = sshll.u32 %s501_s26, 4  ;;  %s1246_s30 = sshll.u32 %s1243_s23, 4  ;;  %s1245_s24 = int_to_ptr.vmem [resolvable:$true] %s1244_s24  ;;  %s1247_s30 = int_to_ptr.hbm [resolvable:$true] %s1246_s30 }
  0x42   : > { %s1231_s5 = scalar_lea.sflag [#allocation5], %s499_s19  ;;  %s1860_s7 = sshra.s32 %s1247_s30, 4  ;;  %s1861_s7 = int_to_ptr.hbm [resolvable:$true] %s1860_s7 }
  0x43   : > { %515 = vxpose.xlu0.b32.start [1/2] (short) (narrow) %v1507_v1, 16  ;;  %s1862_s20 = scalar_lea.hbm %s1861_s7, 16  ;;  %s1866_s12 = scalar_lea.hbm %s2302_s11, 32 }
  0x44   : > { %v1649_v51 = vpop.eup %1648  ;;  %p1863_p1 = scmp.ne.s32.totalorder %s1861_s7, %s1862_s20  ;;  %p1867_p5 = scmp.lt.s32.totalorder %s1861_s7, %s2302_s11 }
  0x45   : > { %v700_v52 = vmul.f32 16.0, %v1649_v51  ;;  %vm704_vm8 = vweird.f32 %v1649_v51  ;;  %p1868_p6 = scmp.lt.s32.totalorder %s1866_s12, %s1862_s20 }
  0x46   : > { %p1864_p2 = pnand %p1863_p1, %p2056_p4 }
  0x47   : > { %v701_v53 = vsub.f32 1.0, %v700_v52  ;;  %p1869_p7 = por %p1868_p6, %p1867_p5 }
  0x48   : > { %p1865_p3 = pneg %p1864_p2 }
  0x49   : > { %v702_v54 = vmul.f32 %v1649_v51, %v701_v53 }
  0x4a   : > { %p1870_p9 = pnand %p1869_p7, %p1865_p3 }
  0x4b   : > { %516 = vxpose.xlu0.b32.end [2/2] (short) (narrow) %v1508_v2, 16  ;;  %v703_v55 = vadd.f32 %v1649_v51, %v702_v54 }
  0x4d   : > { %v2182_v56 = vsel %vm704_vm8, %v1649_v51, %v703_v55 }
  0xe7   : > { %v531_v7 = vpop.trf.xlu0 }
  0xe8   : > { %v547_v8 = vpack.c.bf16 %v531_v7, %v531_v7 }
  0xea   : > { %v560_v9 = vrot.slane %v547_v8, 6  ;;  %v618_v14 = vunpack.c.l.b16 %v547_v8 }
  0xec   : > { %569 = vst.msk [vmem:[#allocation2] sm:$0xc] %vm568_vm1, %v560_v9  ;;  %v561_v13 = vrot.slane %v560_v9, 4 }
  0xef   : > { %v532_v10 = vpop.trf.xlu0 }
  0xf0   : > { %v548_v11 = vpack.c.bf16 %v532_v10, %v532_v10 }
  0xf2   : > { %v562_v15 = vrot.slane %v548_v11, 6  ;;  %v619_v16 = vunpack.c.l.b16 %v548_v11 }
  0xf3   : > { %v1409_v22 = vld [vmem:[#allocation2] sm:$0xe] }
  0xf4   : > { %v563_v17 = vsel %vm2164_vm4, %v561_v13, %v562_v15  ;;  %v564_v18 = vrot.slane %v562_v15, 4  ;;  %v620_v19 = vpack.c.b16 %v619_v16, %v618_v14 }
  0xf5   : > { %571 = vst.msk [vmem:[#allocation2 + $0x4] sm:$0xf] %vm570_vm5, %v563_v17 }
  0xf6   : > { %573 = vst.msk [vmem:[#allocation2 + $0x8] sm:$0x3] %vm553_vm0, %v564_v18  ;;  %1420 = vmatmul.msk.bf16.vlgmr.msra.gmra.mxu1 %vm600_vm6, %v620_v19 }
  0xfc   : > { %v1493_v20 = vld [vmem:[#allocation2] sm:$0xff] }
  0xfd   : > { %v1491_v21 = vld [vmem:[#allocation2] sm:$0xf0]  ;;  %v578_v23 = vld [vmem:[#allocation2 + $0x8] sm:$0x1]  ;;  %1431 = vmatmul.msk.bf16.vlgmr.msra.gmra.mxu2 %vm600_vm6, %v1493_v20 }
  0xfe   : > { %v679_v24 = vld [vmem:[#allocation2 + $0x8] sm:$0x3]  ;;  %v587_v25 = vunpack.c.l.b16 %v578_v23  ;;  %v1410_v26 = vor.u32 %v1491_v21, %v1409_v22 }
  0xff   : > { %680 = vst.msk [vmem:[#allocation2] sm:$0x3] %vm553_vm0, %v679_v24 }
 0x100   : > { %v589_v27 = vpack.c.b16 %v587_v25, %v587_v25  ;;  %v591_v28 = vrot.slane %v1410_v26, 1  ;;  %v1635_v25 = vld [vmem:[%s2294_s3] ss:$0 sm:$0xff] }
 0x102   : > { %v592_v29 = vrot.slane %v589_v27, 1 }
 0x104   : > { %v593_v30 = vsel %vm590_vm7, %v591_v28, %v592_v29 }
 0x105   : > { %1415 = vmatmul.msk.bf16.vlgmr.msra.gmra.mxu0 %vm600_vm6, %v593_v30  ;;  %v1636_v30 = vld [vmem:[%s2295_s4] ss:$0 sm:$0xff] }
 0x173   : > { %v639_v31 = vpop.f32.mrf.mxu1 }
 0x17b   : > { %v641_v39 = vpop.f32.mrf.mxu1 }
 0x180   : > { %v672_v33 = vpop.f32.mrf.mxu2 }
 0x182   : > { %v613_v32 = vpop.f32.mrf.mxu0 }
 0x183   : > { %v640_v34 = vadd.f32 %v639_v31, %v613_v32 }
 0x185   : > { %v677_v36 = vadd.f32 %v672_v33, %v640_v34 }
 0x187   : > { %v685_v37 = vadd.f32 %v1634_v35, %v677_v36  ;;  %v1637_v36 = vld [vmem:[#allocation6] ss:$0 sm:$0xff] }
 0x188   : > { %v674_v43 = vpop.f32.mrf.mxu2 }
 0x189   : > { %v687_v38 = vmax.f32 %v685_v37, 0.0 }
 0x18a   : > { %v615_v40 = vpop.f32.mrf.mxu0 }
 0x18b   : > { %v642_v41 = vadd.f32 %v641_v39, %v615_v40  ;;  %v689_v42 = vadd.f32 %v687_v38, %v531_v7  ;;  %v1496_v7 = vld [vmem:[#allocation8] sm:$0xff] }
 0x18c   : > { %809 = vmatpush.bf16.msrb.mxu0 %v1496_v7 }
 0x18d   : > { %v678_v44 = vadd.f32 %v674_v43, %v642_v41  ;;  %v693_v45 = vsel %vm600_vm6, %v689_v42, 0.0  ;;  %v1638_v43 = vld [vmem:[#allocation9] ss:$0 sm:$0xff] }
 0x18e   : > { %694 = vadd.xlane.f32.xlu1 %v693_v45 }
 0x18f   : > { %v686_v46 = vadd.f32 %v1634_v35, %v678_v44 }
 0x191   : > { %v688_v47 = vmax.f32 %v686_v46, 0.0 }
 0x193   : > { %v690_v48 = vadd.f32 %v688_v47, %v532_v10 }
 0x195   : > { %v696_v49 = vsel %vm600_vm6, %v690_v48, 0.0 }
 0x196   : > { %697 = vadd.xlane.f32.xlu1 %v696_v49 }
 0x201   : > { %v695_v57 = vpop.xlane.xlu1 %694 }
 0x202   : > { %v706_v58 = vmul.f32 %v2182_v56, %v695_v57 }
 0x204   : > { %v708_v59 = vsub.f32 %v689_v42, %v706_v58 }
 0x206   : > { %v710_v60 = vmul.f32 %v708_v59, %v708_v59 }
 0x208   : > { %v712_v61 = vsel %vm600_vm6, %v710_v60, 0.0 }
 0x209   : > { %713 = vadd.xlane.f32.xlu2 %v712_v61  ;;  %v698_v62 = vpop.xlane.xlu1 %697 }
 0x20a   : > { %v707_v63 = vmul.f32 %v2182_v56, %v698_v62 }
 0x20c   : > { %v709_v0 = vsub.f32 %v690_v48, %v707_v63 }
 0x20e   : > { %v711_v1 = vmul.f32 %v709_v0, %v709_v0 }
 0x210   : > { %v715_v2 = vsel %vm600_vm6, %v711_v1, 0.0  ;;  %v1497_v1 = vld [vmem:[%s2292_s1 + $0x18] sm:$0xff] }
 0x211   : > { %716 = vadd.xlane.f32.xlu2 %v715_v2  ;;  %v1501_v2 = vld [vmem:[%s2292_s1 + $0x28] sm:$0xff]  ;;  %957 = vmatpush.bf16.msrb.mxu2 %v1497_v1 }
 0x212   : > { %990 = vmatpush.bf16.msrb.mxu3 %v1501_v2 }
 0x27c   : > { %v714_v4 = vpop.xlane.xlu2 %713 }
 0x27d   : > { %v718_v5 = vmul.f32 %v714_v4, %v2182_v56 }
 0x27f   : > { %v720_v6 = vadd.f32 1e-05, %v718_v5 }
 0x281   : > { %1650 = vrsqrt.f32 %v720_v6  ;;  %vm728_vm10 = vweird.f32 %v720_v6 }
 0x284   : > { %v717_v8 = vpop.xlane.xlu2 %716 }
 0x285   : > { %v719_v9 = vmul.f32 %v717_v8, %v2182_v56 }
 0x287   : > { %v1651_v10 = vpop.eup %1650  ;;  %v721_v11 = vadd.f32 1e-05, %v719_v9 }
 0x288   : > { %v723_v13 = vmul.f32 %v1651_v10, %v720_v6  ;;  %vm729_vm9 = vweird.f32 %v1651_v10 }
 0x289   : > { %1652 = vrsqrt.f32 %v721_v11  ;;  %vm730_vm11 = vmor %vm728_vm10, %vm729_vm9  ;;  %vm738_vm13 = vweird.f32 %v721_v11 }
 0x28a   : > { %v724_v14 = vmul.f32 %v1651_v10, %v723_v13 }
 0x28c   : > { %v725_v15 = vmul.f32 0.5, %v724_v14 }
 0x28e   : > { %v726_v16 = vsub.f32 1.5, %v725_v15 }
 0x28f   : > { %v1653_v17 = vpop.eup %1652 }
 0x290   : > { %v727_v18 = vmul.f32 %v1651_v10, %v726_v16  ;;  %v733_v19 = vmul.f32 %v1653_v17, %v721_v11  ;;  %vm739_vm12 = vweird.f32 %v1653_v17 }
 0x291   : > { %vm740_vm14 = vmor %vm738_vm13, %vm739_vm12 }
 0x292   : > { %v734_v20 = vmul.f32 %v1653_v17, %v733_v19  ;;  %v731_v21 = vsel %vm730_vm11, %v1651_v10, %v727_v18 }
 0x293   : > { %v742_v24 = vmul.f32 %v731_v21, %v708_v59  ;;  %v1640_v21 = vld [vmem:[#allocation12] ss:$0 sm:$0xff] }
 0x294   : > { %v735_v22 = vmul.f32 0.5, %v734_v20 }
 0x295   : > { %v747_v29 = vmul.f32 %v1635_v25, %v742_v24 }
 0x296   : > { %v736_v23 = vsub.f32 1.5, %v735_v22 }
 0x297   : > { %v752_v32 = vadd.f32 %v1636_v30, %v747_v29 }
 0x298   : > { %v737_v26 = vmul.f32 %v1653_v17, %v736_v23 }
 0x29a   : > { %v741_v27 = vsel %vm740_vm14, %v1653_v17, %v737_v26  ;;  %v1639_v17 = vld [vmem:[#allocation11] ss:$0 sm:$0xff] }
 0x29b   : > { %v743_v28 = vmul.f32 %v741_v27, %v709_v0 }
 0x29d   : > { %v748_v31 = vmul.f32 %v1635_v25, %v743_v28 }
 0x29f   : > { %v753_v33 = vadd.f32 %v1636_v30, %v748_v31 }
 0x2a1   : > { %v754_v34 = vpack.c.bf16 %v753_v33, %v752_v32 }
 0x2a3   : > { %1436 = vmatmul.msk.bf16.vlgmr.msra.gmra.mxu3 %vm600_vm6, %v754_v34 }
 0x326   : > { %v779_v35 = vpop.f32.mrf.mxu3 }
 0x327   : > { %v780_v37 = vadd.f32 %v1637_v36, %v779_v35 }
 0x329   : > { %v784_v40 = vmax.f32 %v780_v37, 0.0 }
 0x32e   : > { %v781_v38 = vpop.f32.mrf.mxu3 }
 0x32f   : > { %v782_v39 = vadd.f32 %v1637_v36, %v781_v38 }
 0x331   : > { %v785_v41 = vmax.f32 %v782_v39, 0.0 }
 0x333   : > { %v786_v42 = vpack.c.bf16 %v785_v41, %v784_v40 }
 0x335   : > { %1441 = vmatmul.msk.bf16.vlgmr.msrb.gmra.mxu0 %vm600_vm6, %v786_v42 }
 0x3b2   : > { %v811_v44 = vpop.f32.mrf.mxu0 }
 0x3b3   : > { %v812_v45 = vadd.f32 %v1638_v43, %v811_v44 }
 0x3b5   : > { %v816_v46 = vadd.f32 %v812_v45, %v752_v32 }
 0x3b7   : > { %v820_v47 = vsel %vm600_vm6, %v816_v46, 0.0 }
 0x3b8   : > { %821 = vadd.xlane.f32.xlu0 %v820_v47 }
 0x3ba   : > { %v813_v48 = vpop.f32.mrf.mxu0 }
 0x3bb   : > { %v814_v49 = vadd.f32 %v1638_v43, %v813_v48 }
 0x3bd   : > { %v817_v50 = vadd.f32 %v814_v49, %v753_v33 }
 0x3bf   : > { %v823_v51 = vsel %vm600_vm6, %v817_v50, 0.0 }
 0x3c0   : > { %824 = vadd.xlane.f32.xlu1 %v823_v51 }
 0x42b   : > { %v822_v52 = vpop.xlane.xlu0 %821 }
 0x42c   : > { %v826_v53 = vmul.f32 %v822_v52, %v2182_v56 }
 0x42e   : > { %v828_v54 = vsub.f32 %v816_v46, %v826_v53 }
 0x430   : > { %v830_v55 = vmul.f32 %v828_v54, %v828_v54 }
 0x432   : > { %v832_v57 = vsel %vm600_vm6, %v830_v55, 0.0  ;;  %v1641_v55 = vld [vmem:[%s2293_s2 + $0x1] ss:$0 sm:$0xff] }
 0x433   : > { %v825_v58 = vpop.xlane.xlu1 %824  ;;  %833 = vadd.xlane.f32.xlu2 %v832_v57 }
 0x434   : > { %v827_v59 = vmul.f32 %v825_v58, %v2182_v56 }
 0x436   : > { %v829_v60 = vsub.f32 %v817_v50, %v827_v59 }
 0x438   : > { %v831_v61 = vmul.f32 %v829_v60, %v829_v60 }
 0x43a   : > { %v835_v62 = vsel %vm600_vm6, %v831_v61, 0.0 }
 0x43b   : > { %836 = vadd.xlane.f32.xlu1 %v835_v62 }
 0x4a6   : > { %v834_v63 = vpop.xlane.xlu2 %833 }
 0x4a7   : > { %v838_v0 = vmul.f32 %v834_v63, %v2182_v56 }
 0x4a9   : > { %v840_v4 = vadd.f32 1e-05, %v838_v0 }
 0x4ab   : > { %1654 = vrsqrt.f32 %v840_v4  ;;  %vm848_vm2 = vweird.f32 %v840_v4 }
 0x4ae   : > { %v837_v5 = vpop.xlane.xlu1 %836 }
 0x4af   : > { %v839_v6 = vmul.f32 %v837_v5, %v2182_v56 }
 0x4b1   : > { %v1655_v7 = vpop.eup %1654  ;;  %v841_v8 = vadd.f32 1e-05, %v839_v6 }
 0x4b2   : > { %v843_v9 = vmul.f32 %v1655_v7, %v840_v4  ;;  %vm849_vm15 = vweird.f32 %v1655_v7 }
 0x4b3   : > { %1656 = vrsqrt.f32 %v841_v8  ;;  %vm850_vm3 = vmor %vm848_vm2, %vm849_vm15  ;;  %vm858_vm9 = vweird.f32 %v841_v8 }
 0x4b4   : > { %v844_v10 = vmul.f32 %v1655_v7, %v843_v9 }
 0x4b6   : > { %v845_v11 = vmul.f32 0.5, %v844_v10 }
 0x4b8   : > { %v846_v13 = vsub.f32 1.5, %v845_v11 }
 0x4b9   : > { %v1657_v14 = vpop.eup %1656 }
 0x4ba   : > { %v847_v15 = vmul.f32 %v1655_v7, %v846_v13  ;;  %v853_v16 = vmul.f32 %v1657_v14, %v841_v8  ;;  %vm859_vm8 = vweird.f32 %v1657_v14 }
 0x4bb   : > { %vm860_vm10 = vmor %vm858_vm9, %vm859_vm8 }
 0x4bc   : > { %v851_v18 = vsel %vm850_vm3, %v1655_v7, %v847_v15  ;;  %v854_v19 = vmul.f32 %v1657_v14, %v853_v16 }
 0x4bd   : > { %v862_v20 = vmul.f32 %v851_v18, %v828_v54 }
 0x4be   : > { %v855_v22 = vmul.f32 0.5, %v854_v19 }
 0x4bf   : > { %v867_v23 = vmul.f32 %v1639_v17, %v862_v20  ;;  %v1502_v20 = vld [vmem:[#allocation3 + $0x8] sm:$0xff] }
 0x4c0   : > { %v856_v24 = vsub.f32 1.5, %v855_v22  ;;  %1095 = vmatpush.bf16.msra.mxu0 %v1502_v20  ;;  %v1503_v22 = vld [vmem:[#allocation8 + $0x8] sm:$0xff] }
 0x4c1   : > { %v872_v25 = vadd.f32 %v1640_v21, %v867_v23  ;;  %1129 = vmatpush.bf16.msra.mxu1 %v1503_v22 }
 0x4c2   : > { %v857_v26 = vmul.f32 %v1657_v14, %v856_v24 }
 0x4c3   : > { %v874_v27 = vpack.c.bf16 %v872_v25, %v872_v25 }
 0x4c4   : > { %v861_v28 = vsel %vm860_vm10, %v1657_v14, %v857_v26 }
 0x4c5   : > { %v863_v29 = vmul.f32 %v861_v28, %v829_v60  ;;  %v883_v30 = vrot.slane %v874_v27, 6  ;;  %v938_v36 = vunpack.c.l.b16 %v874_v27 }
 0x4c7   : > { %v868_v31 = vmul.f32 %v1639_v17, %v863_v29  ;;  %892 = vst.msk [vmem:[#allocation2 + $0xc] sm:$0xc] %vm568_vm1, %v883_v30  ;;  %v884_v34 = vrot.slane %v883_v30, 4 }
 0x4c9   : > { %v873_v32 = vadd.f32 %v1640_v21, %v868_v31 }
 0x4cb   : > { %v875_v33 = vpack.c.bf16 %v873_v32, %v873_v32 }
 0x4cd   : > { %v885_v35 = vrot.slane %v875_v33, 6  ;;  %v939_v37 = vunpack.c.l.b16 %v875_v33 }
 0x4ce   : > { %v1448_v43 = vld [vmem:[#allocation2 + $0xc] sm:$0xe] }
 0x4cf   : > { %v886_v38 = vsel %vm2164_vm4, %v884_v34, %v885_v35  ;;  %v887_v39 = vrot.slane %v885_v35, 4  ;;  %v940_v40 = vpack.c.b16 %v939_v37, %v938_v36 }
 0x4d0   : > { %893 = vst.msk [vmem:[#allocation2 + $0x10] sm:$0xf] %vm570_vm5, %v886_v38  ;;  %v1642_v38 = vld [vmem:[%s2294_s3 + $0x1] ss:$0 sm:$0xff] }
 0x4d1   : > { %894 = vst.msk [vmem:[#allocation2 + $0x14] sm:$0x3] %vm553_vm0, %v887_v39  ;;  %1459 = vmatmul.msk.bf16.vlgmr.msrb.gmra.mxu2 %vm600_vm6, %v940_v40 }
 0x4d7   : > { %v1500_v41 = vld [vmem:[#allocation2 + $0xc] sm:$0xff] }
 0x4d8   : > { %v1498_v42 = vld [vmem:[#allocation2 + $0xc] sm:$0xf0]  ;;  %v900_v44 = vld [vmem:[#allocation2 + $0x14] sm:$0x1]  ;;  %1470 = vmatmul.msk.bf16.vlgmr.msrb.gmra.mxu3 %vm600_vm6, %v1500_v41 }
 0x4d9   : > { %v999_v45 = vld [vmem:[#allocation2 + $0x14] sm:$0x3]  ;;  %v909_v46 = vunpack.c.l.b16 %v900_v44  ;;  %v1449_v47 = vor.u32 %v1498_v42, %v1448_v43  ;;  %v1643_v42 = vld [vmem:[%s2295_s4 + $0x1] ss:$0 sm:$0xff] }
 0x4da   : > { %1000 = vst.msk [vmem:[#allocation2 + $0xc] sm:$0x3] %vm553_vm0, %v999_v45 }
 0x4db   : > { %v911_v12 = vpack.c.b16 %v909_v46, %v909_v46  ;;  %v912_v48 = vrot.slane %v1449_v47, 1 }
 0x4dd   : > { %v913_v49 = vrot.slane %v911_v12, 1 }
 0x4df   : > { %v914_v50 = vsel %vm590_vm7, %v912_v48, %v913_v49  ;;  %v1644_v49 = vld [vmem:[#allocation6 + $0x1] ss:$0 sm:$0xff] }
 0x4e0   : > { %1454 = vmatmul.msk.bf16.vlgmr.msrb.gmra.mxu1 %vm600_vm6, %v914_v50 }
 0x554   : > { %v959_v51 = vpop.f32.mrf.mxu2 }
 0x55b   : > { %v992_v53 = vpop.f32.mrf.mxu3 }
 0x55c   : > { %v961_v60 = vpop.f32.mrf.mxu2 }
 0x55d   : > { %v933_v52 = vpop.f32.mrf.mxu1 }
 0x55e   : > { %v960_v54 = vadd.f32 %v959_v51, %v933_v52 }
 0x560   : > { %v997_v57 = vadd.f32 %v992_v53, %v960_v54 }
 0x562   : > { %v1006_v58 = vadd.f32 %v1641_v55, %v997_v57  ;;  %v1645_v57 = vld [vmem:[#allocation9 + $0x1] ss:$0 sm:$0xff] }
 0x563   : > { %v994_v0 = vpop.f32.mrf.mxu3 }
 0x564   : > { %v1008_v59 = vmax.f32 %v1006_v58, 0.0 }
 0x565   : > { %v935_v61 = vpop.f32.mrf.mxu1 }
 0x566   : > { %v962_v62 = vadd.f32 %v961_v60, %v935_v61  ;;  %v1010_v63 = vadd.f32 %v1008_v59, %v872_v25 }
 0x568   : > { %v998_v1 = vadd.f32 %v994_v0, %v962_v62  ;;  %v1016_v2 = vsel %vm600_vm6, %v1010_v63, 0.0 }
 0x569   : > { %1017 = vadd.xlane.f32.xlu2 %v1016_v2 }
 0x56a   : > { %v1007_v3 = vadd.f32 %v1641_v55, %v998_v1 }
 0x56c   : > { %v1009_v4 = vmax.f32 %v1007_v3, 0.0 }
 0x56e   : > { %v1011_v5 = vadd.f32 %v1009_v4, %v873_v32 }
 0x570   : > { %v1019_v6 = vsel %vm600_vm6, %v1011_v5, 0.0 }
 0x571   : > { %1020 = vadd.xlane.f32.xlu1 %v1019_v6 }
 0x5dc   : > { %v1018_v7 = vpop.xlane.xlu2 %1017 }
 0x5dd   : > { %v1022_v8 = vmul.f32 %v1018_v7, %v2182_v56 }
 0x5df   : > { %v1024_v9 = vsub.f32 %v1010_v63, %v1022_v8 }
 0x5e1   : > { %v1026_v10 = vmul.f32 %v1024_v9, %v1024_v9 }
 0x5e3   : > { %v1028_v11 = vsel %vm600_vm6, %v1026_v10, 0.0 }
 0x5e4   : > { %1029 = vadd.xlane.f32.xlu2 %v1028_v11  ;;  %v1021_v13 = vpop.xlane.xlu1 %1020 }
 0x5e5   : > { %v1023_v14 = vmul.f32 %v1021_v13, %v2182_v56 }
 0x5e7   : > { %v1025_v15 = vsub.f32 %v1011_v5, %v1023_v14 }
 0x5e9   : > { %v1027_v16 = vmul.f32 %v1025_v15, %v1025_v15 }
 0x5eb   : > { %v1031_v17 = vsel %vm600_vm6, %v1027_v16, 0.0 }
 0x5ec   : > { %1032 = vadd.xlane.f32.xlu1 %v1031_v17 }
 0x657   : > { %v1030_v18 = vpop.xlane.xlu2 %1029 }
 0x658   : > { %v1034_v19 = vmul.f32 %v1030_v18, %v2182_v56 }
 0x65a   : > { %v1036_v21 = vadd.f32 1e-05, %v1034_v19 }
 0x65c   : > { %1658 = vrsqrt.f32 %v1036_v21  ;;  %vm1044_vm1 = vweird.f32 %v1036_v21 }
 0x65f   : > { %v1033_v23 = vpop.xlane.xlu1 %1032 }
 0x660   : > { %v1035_v24 = vmul.f32 %v1033_v23, %v2182_v56 }
 0x662   : > { %v1659_v25 = vpop.eup %1658  ;;  %v1037_v26 = vadd.f32 1e-05, %v1035_v24 }
 0x663   : > { %v1039_v27 = vmul.f32 %v1659_v25, %v1036_v21  ;;  %vm1045_vm0 = vweird.f32 %v1659_v25 }
 0x664   : > { %1660 = vrsqrt.f32 %v1037_v26  ;;  %vm1046_vm4 = vmor %vm1044_vm1, %vm1045_vm0  ;;  %vm1054_vm7 = vweird.f32 %v1037_v26 }
 0x665   : > { %v1040_v28 = vmul.f32 %v1659_v25, %v1039_v27  ;;  %v1646_v27 = vld [vmem:[#allocation11 + $0x1] ss:$0 sm:$0xff] }
 0x667   : > { %v1041_v29 = vmul.f32 0.5, %v1040_v28 }
 0x669   : > { %v1042_v30 = vsub.f32 1.5, %v1041_v29 }
 0x66a   : > { %v1661_v31 = vpop.eup %1660 }
 0x66b   : > { %v1043_v32 = vmul.f32 %v1659_v25, %v1042_v30  ;;  %v1049_v33 = vmul.f32 %v1661_v31, %v1037_v26  ;;  %vm1055_vm5 = vweird.f32 %v1661_v31 }
 0x66c   : > { %vm1056_vm11 = vmor %vm1054_vm7, %vm1055_vm5 }
 0x66d   : > { %v1050_v34 = vmul.f32 %v1661_v31, %v1049_v33  ;;  %v1047_v35 = vsel %vm1046_vm4, %v1659_v25, %v1043_v32 }
 0x66e   : > { %v1058_v39 = vmul.f32 %v1047_v35, %v1024_v9 }
 0x66f   : > { %v1051_v36 = vmul.f32 0.5, %v1050_v34 }
 0x670   : > { %v1063_v43 = vmul.f32 %v1642_v38, %v1058_v39 }
 0x671   : > { %v1052_v37 = vsub.f32 1.5, %v1051_v36 }
 0x672   : > { %v1068_v46 = vadd.f32 %v1643_v42, %v1063_v43 }
 0x673   : > { %v1053_v40 = vmul.f32 %v1661_v31, %v1052_v37 }
 0x675   : > { %v1057_v41 = vsel %vm1056_vm11, %v1661_v31, %v1053_v40  ;;  %v1647_v31 = vld [vmem:[#allocation12 + $0x1] ss:$0 sm:$0xff] }
 0x676   : > { %v1059_v44 = vmul.f32 %v1057_v41, %v1025_v15 }
 0x678   : > { %v1064_v45 = vmul.f32 %v1642_v38, %v1059_v44 }
 0x67a   : > { %v1069_v47 = vadd.f32 %v1643_v42, %v1064_v45 }
 0x67c   : > { %v1070_v12 = vpack.c.bf16 %v1069_v47, %v1068_v46 }
 0x67e   : > { %1478 = vmatmul.msk.bf16.vlgmr.msra.gmra.mxu0 %vm600_vm6, %v1070_v12 }
 0x6fb   : > { %v1097_v48 = vpop.f32.mrf.mxu0 }
 0x6fc   : > { %v1098_v50 = vadd.f32 %v1644_v49, %v1097_v48 }
 0x6fe   : > { %v1102_v53 = vmax.f32 %v1098_v50, 0.0 }
 0x703   : > { %v1099_v51 = vpop.f32.mrf.mxu0 }
 0x704   : > { %v1100_v52 = vadd.f32 %v1644_v49, %v1099_v51 }
 0x706   : > { %v1103_v54 = vmax.f32 %v1100_v52, 0.0 }
 0x708   : > { %v1104_v55 = vpack.c.bf16 %v1103_v54, %v1102_v53 }
 0x70a   : > { %1483 = vmatmul.msk.bf16.vlgmr.msra.gmra.mxu1 %vm600_vm6, %v1104_v55 }
 0x787   : > { %v1131_v58 = vpop.f32.mrf.mxu1 }
 0x788   : > { %v1132_v59 = vadd.f32 %v1645_v57, %v1131_v58 }
 0x78a   : > { %v1136_v60 = vadd.f32 %v1132_v59, %v1068_v46 }
 0x78c   : > { %v1142_v61 = vsel %vm600_vm6, %v1136_v60, 0.0 }
 0x78d   : > { %1143 = vadd.xlane.f32.xlu2 %v1142_v61 }
 0x78f   : > { %v1133_v62 = vpop.f32.mrf.mxu1 }
 0x790   : > { %v1134_v63 = vadd.f32 %v1645_v57, %v1133_v62 }
 0x792   : > { %v1137_v0 = vadd.f32 %v1134_v63, %v1069_v47 }
 0x794   : > { %v1145_v1 = vsel %vm600_vm6, %v1137_v0, 0.0 }
 0x795   : > { %1146 = vadd.xlane.f32.xlu1 %v1145_v1 }
 0x800   : > { %v1144_v2 = vpop.xlane.xlu2 %1143 }
 0x801   : > { %v1148_v3 = vmul.f32 %v1144_v2, %v2182_v56 }
 0x803   : > { %v1150_v4 = vsub.f32 %v1136_v60, %v1148_v3 }
 0x805   : > { %v1152_v5 = vmul.f32 %v1150_v4, %v1150_v4 }
 0x807   : > { %v1154_v6 = vsel %vm600_vm6, %v1152_v5, 0.0 }
 0x808   : > { %v1147_v7 = vpop.xlane.xlu1 %1146  ;;  %1155 = vadd.xlane.f32.xlu2 %v1154_v6 }
 0x809   : > { %v1149_v8 = vmul.f32 %v1147_v7, %v2182_v56 }
 0x80b   : > { %v1151_v9 = vsub.f32 %v1137_v0, %v1149_v8 }
 0x80d   : > { %v1153_v10 = vmul.f32 %v1151_v9, %v1151_v9 }
 0x80f   : > { %v1157_v11 = vsel %vm600_vm6, %v1153_v10, 0.0 }
 0x810   : > { %1158 = vadd.xlane.f32.xlu1 %v1157_v11 }
 0x87b   : > { %v1156_v13 = vpop.xlane.xlu2 %1155 }
 0x87c   : > { %v1160_v14 = vmul.f32 %v1156_v13, %v2182_v56 }
 0x87e   : > { %v1162_v15 = vadd.f32 1e-05, %v1160_v14 }
 0x880   : > { %1662 = vrsqrt.f32 %v1162_v15  ;;  %vm1170_vm13 = vweird.f32 %v1162_v15 }
 0x883   : > { %v1159_v16 = vpop.xlane.xlu1 %1158 }
 0x884   : > { %v1161_v17 = vmul.f32 %v1159_v16, %v2182_v56 }
 0x886   : > { %v1663_v18 = vpop.eup %1662  ;;  %v1163_v19 = vadd.f32 1e-05, %v1161_v17 }
 0x887   : > { %v1165_v20 = vmul.f32 %v1663_v18, %v1162_v15  ;;  %vm1171_vm12 = vweird.f32 %v1663_v18 }
 0x888   : > { %1664 = vrsqrt.f32 %v1163_v19  ;;  %vm1172_vm14 = vmor %vm1170_vm13, %vm1171_vm12  ;;  %vm1180_vm2 = vweird.f32 %v1163_v19 }
 0x889   : > { %v1166_v21 = vmul.f32 %v1663_v18, %v1165_v20 }
 0x88b   : > { %v1167_v22 = vmul.f32 0.5, %v1166_v21 }
 0x88d   : > { %v1168_v23 = vsub.f32 1.5, %v1167_v22 }
 0x88e   : > { %v1665_v24 = vpop.eup %1664 }
 0x88f   : > { %v1169_v25 = vmul.f32 %v1663_v18, %v1168_v23  ;;  %v1175_v26 = vmul.f32 %v1665_v24, %v1163_v19  ;;  %vm1181_vm15 = vweird.f32 %v1665_v24 }
 0x890   : > { %vm1182_vm3 = vmor %vm1180_vm2, %vm1181_vm15 }
 0x891   : > { %v1176_v28 = vmul.f32 %v1665_v24, %v1175_v26  ;;  %v1173_v29 = vsel %vm1172_vm14, %v1663_v18, %v1169_v25 }
 0x892   : > { %v1184_v30 = vmul.f32 %v1173_v29, %v1150_v4 }
 0x893   : > { %v1177_v56 = vmul.f32 0.5, %v1176_v28 }
 0x894   : > { %v1189_v32 = vmul.f32 %v1646_v27, %v1184_v30 }
 0x895   : > { %v1178_v33 = vsub.f32 1.5, %v1177_v56 }
 0x896   : > { %v1194_v34 = vadd.f32 %v1647_v31, %v1189_v32 }
 0x897   : > { %v1179_v35 = vmul.f32 %v1665_v24, %v1178_v33 }
 0x898   : > { %1196 = vxpose.xlu2.b32.start [1/2] (short) (narrow) %v1194_v34, 16 }
 0x899   : > { %v1183_v36 = vsel %vm1182_vm3, %v1665_v24, %v1179_v35 }
 0x89a   : > { %v1185_v37 = vmul.f32 %v1183_v36, %v1151_v9 }
 0x89c   : > { %v1190_v38 = vmul.f32 %v1646_v27, %v1185_v37 }
 0x89e   : > { %v1195_v39 = vadd.f32 %v1647_v31, %v1190_v38 }
 0x8a0   : > { %1197 = vxpose.xlu2.b32.end [2/2] (short) (narrow) %v1195_v39, 16 }
 0x931   : > { %v1212_v40 = vpop.trf.xlu2 }
 0x932   : > { %1228 = vst.msk [vmem:[%s501_s26] sm:$0xff] %vm600_vm6, %v1212_v40 }
 0x939   : > { %v1213_v41 = vpop.trf.xlu2 }
 0x93a   : > { %1229 = vst.msk [vmem:[%s501_s26 + $0x8] sm:$0xff] %vm600_vm6, %v1213_v41 }
 0x93b   : > { %1873 = shalt.err (!%p1870_p9)
}
 0x93c   : > { %s1954_s14 = smov 128   ;;  %s1955_s15 = smov 8  }
 0x93d   : > { %1533 = dma.vmem_to_hbm [thread:$0]  (%p2056_p4), %s1245_s24, 256, %s1247_s30, %s1231_s5, %s1954_s14, %s1954_s14, %s1955_s15  }
 0x93e PF: > { %s2335_s16 = sld [smem:[#allocation20_spill]]  ;;  %p1570_p10 = scmp.ge.s32.totalorder %s1940_s22, 2 }
 0x940   : > { %p1555_p11 = pnand %p1570_p10, %p2063_p8 }
 0x942   : > { %p1556_p12 = pneg %p1555_p11 }
 0x944   : > { %s1261_s6 = sand.u32 1, %s2335_s16  }
 0x945   : > { %s1262_s21 = scalar_lea.sflag [#allocation5], %s1261_s6 }
 0x946   : > { %1915 = dma.done.wait (%p1556_p12), %s1262_s21, 256  }
 0x947   : > { %1917 = vsyncadd (%p1556_p12), %s1262_s21, 4294967040  ;;  %s28_s22 = sadd.s32 1, %s1940_s22   ;;  %s2337_s25 = sld [smem:[#allocation21_spill]] }
 0x948   : > { %p25_p13 = scmp.ge.s32.totalorder %s28_s22, 4   ;;  %s2338_s19 = sld [smem:[#allocation25_spill]] }
 0x949   : > { %s2339_s20 = sld [smem:[#allocation22_spill]]  ;;  %s2341_s17 = smov %s1924_s18 }
 0x94a   : > { %s2340_s21 = sld [smem:[#allocation23_spill]]  ;;  %27 = sbr.rel (!%p25_p13) target bundleno = 13 (0xd), region = 148 }
 0x94d   : > { %s2342_s18 = smov %s2337_s25 }
 0x94f   :  { %1268 = vsyncpa [#allocation4], 1 }
 0x950   :  { %1270 = vsyncpa [#allocation4 + $0x1], 1 }
 0x951   :  { %1271 = vsyncpa [#allocation7], 1 }
 0x952   :  { %1272 = vsyncpa [#allocation10], 1 }
 0x953   :  { %1273 = vsyncpa [#allocation13], 1 }
 0x954   :  { %1274 = vsyncpa [#allocation5], 1 }
 0x955   :  { %1276 = vsyncpa [#allocation5 + $0x1], 1 }

</bundles_post_ra>
